<compile_context>
chip_gen: v6e
topology: v6e:2x2x1
jax: 0.10.0
libtpu: 0.0.40
codegen_flags: <defaults>
</compile_context>

<pallas_src>
import jax
import jax.numpy as jnp
from jax.experimental import pallas as pl
from jax.experimental.pallas import tpu as pltpu

EMB = 128
H1, C1 = 4, EMB // 4     # gat1: 4 heads x 32, concat -> 128
H2, C2 = 1, EMB          # gat2: 1 head  x 128
NEG_INF = -1e30          # python float -> jaxpr literal (no captured constants)
BF = jnp.bfloat16


# ----------------------------- kernel helpers ------------------------------ #

def _leaky(x, slope=0.01):
    """nn.LeakyReLU() (default negative_slope=0.01)."""
    return jnp.where(x > 0, x, slope * x)


def _dot(a, b_bf16):
    """MXU matmul: bf16 operands, f32 accumulation."""
    return jnp.dot(a.astype(BF), b_bf16, preferred_element_type=jnp.float32)


def _gat_attention(xw_bf, edge_mask, att_src, att_dst):
    """Batched multi-head dense GAT attention (concat=True, slope=0.2).

    xw_bf:     (H, N, C) bf16 transformed node features
    edge_mask: (N, N) bool, True for edges dst<-src (self-loops included)
    att_*:     (H, 1, C) bf16
    returns    (H, N, C) f32 softmax-normalized aggregation
    """
    # per-node per-head logits: two batched matvecs (standard 'bqd,bkd->bqk')
    a_dst = jnp.einsum('hnc,hyc->hny', xw_bf, att_dst,
                       preferred_element_type=jnp.float32)          # (H, N, 1)
    a_src = jnp.einsum('hyc,hnc->hyn', att_src, xw_bf,
                       preferred_element_type=jnp.float32)          # (H, 1, N)
    e = a_dst + a_src                                               # (H, N, N)
    # fused leaky_relu(0.2) + edge mask: one pass, no f32 mask tensor
    e = jnp.where(edge_mask[None, :, :], jnp.where(e > 0, e, 0.2 * e), NEG_INF)
    e = e - jnp.max(e, axis=-1, keepdims=True)
    p = jnp.exp(e)                                                  # masked -> 0
    denom = jnp.sum(p, axis=-1, keepdims=True)                      # >= 1 (self loop)
    out = jnp.einsum('hij,hjc->hic', p.astype(BF), xw_bf,
                     preferred_element_type=jnp.float32)            # (H, N, C)
    # normalize AFTER the aggregation: (H,N,C) scale instead of an (H,N,N) pass
    return out * pl.reciprocal(denom, approx=True)


# ------------------------------ fused kernel ------------------------------- #

def botgat_kernel(des_ref, tweet_ref, num_ref, cat_ref, adj_ref,
                  wdes_ref, wtw_ref, wnum_ref, wcat_ref, benc_ref,
                  wi_ref, bi_ref,
                  g1w_ref, g1as_ref, g1ad_ref, g1b_ref,
                  g2w_ref, g2as_ref, g2ad_ref, g2b_ref,
                  w1_ref, b1_ref, w2_ref, b2_ref,
                  out_ref):
    n = des_ref.shape[0]

    # encoder: four linears + concat fused via lane-segmented 128-wide weights
    x = _dot(des_ref[...], wdes_ref[...])
    x += _dot(tweet_ref[...], wtw_ref[...])
    x += _dot(num_ref[...], wnum_ref[...])
    x += _dot(cat_ref[...], wcat_ref[...])
    x = _leaky(x + benc_ref[...])                                   # (N, 128)

    # linear_relu_input
    x = _leaky(_dot(x, wi_ref[...]) + bi_ref[...])                  # (N, 128)

    # bool edge mask built once, reused by both GAT layers / all heads
    edge_mask = adj_ref[...] > 0                                    # (N, N)

    # ---- gat1: 4 heads x 32, fully batched over heads
    x_b = jnp.broadcast_to(x.astype(BF)[None], (H1, n, EMB))        # (4, N, 128)
    xw1 = jnp.einsum('hnk,hkc->hnc', x_b, g1w_ref[...],
                     preferred_element_type=jnp.float32)            # (4, N, 32)
    o1 = _gat_attention(xw1.astype(BF), edge_mask,
                        g1as_ref[...], g1ad_ref[...])               # (4, N, 32)
    # F.dropout(p=0.3, training=False) -> identity (inference)
    # head-concat + gat1 bias + gat2 input linear fused: contract (h, c) against
    # gat2's weight laid out as (H1, C1, 128) -> no (N,128) concat/relayout.
    xw2 = jnp.einsum('hnc,hcd->hnd', (o1 + g1b_ref[...]).astype(BF), g2w_ref[...],
                     preferred_element_type=jnp.float32)            # (4, N, 128)
    xw2 = jnp.sum(xw2, axis=0)                                      # (N, 128)

    # ---- gat2: 1 head x 128 (xw2 already computed)
    o2 = _gat_attention(xw2.astype(BF)[None], edge_mask,
                        g2as_ref[...], g2ad_ref[...])               # (1, N, 128)
    x2 = o2[0] + g2b_ref[...]                                       # (N, 128)

    # ---- output head
    h = _leaky(_dot(x2, w1_ref[...]) + b1_ref[...])                 # linear_relu_output1
    # linear_output2 zero-padded from 2 to 128 lanes (lane-dense unmasked store);
    # the (N, 2) slice happens in the JAX wrapper.
    out_ref[...] = _dot(h, w2_ref[...]) + b2_ref[...]


# ------------------------------ params / graph ------------------------------ #

def init_params(key, des_size=768, tweet_size=768, num_prop_size=6,
                cat_prop_size=11, emb=EMB):
    q = emb // 4
    s = 0.05
    ks = iter(jax.random.split(key, 32))

    def w(fin, fout):
        return s * jax.random.normal(next(ks), (fin, fout), jnp.float32)

    def b(*shape):
        return s * jax.random.normal(next(ks), shape, jnp.float32)

    num_pad, cat_pad = 8, 16    # tiny K dims padded to sublane multiples

    # each encoder linear writes its own 32-lane segment of a 128-wide output
    w_des = jnp.zeros((des_size, emb), jnp.float32).at[:, 0*q:1*q].set(w(des_size, q))
    w_tw = jnp.zeros((tweet_size, emb), jnp.float32).at[:, 1*q:2*q].set(w(tweet_size, q))
    w_num = jnp.zeros((num_pad, emb), jnp.float32).at[:num_prop_size, 2*q:3*q].set(
        w(num_prop_size, q))
    w_cat = jnp.zeros((cat_pad, emb), jnp.float32).at[:cat_prop_size, 3*q:4*q].set(
        w(cat_prop_size, q))
    b_enc = b(1, emb)

    # gat1 parameters in head-batched layouts
    g1w = w(emb, H1 * C1).reshape(emb, H1, C1).transpose(1, 0, 2)   # (H1, 128, C1)
    g1as = b(1, H1 * C1).reshape(H1, 1, C1)
    g1ad = b(1, H1 * C1).reshape(H1, 1, C1)
    g1b = b(1, H1 * C1).reshape(H1, 1, C1)

    # gat2 weight reshaped for the fused (h, c) contraction with gat1's output
    g2w = w(emb, emb).reshape(H1, C1, emb)                          # (H1, C1, 128)
    g2as = b(1, emb).reshape(H2, 1, C2)
    g2ad = b(1, emb).reshape(H2, 1, C2)
    g2b = b(1, emb)

    w_o1, b_o1 = w(emb, emb), b(1, emb)
    # output head zero-padded from 2 to 128 lanes
    w_o2 = jnp.zeros((emb, emb), jnp.float32).at[:, :2].set(w(emb, 2))
    b_o2 = jnp.zeros((1, emb), jnp.float32).at[:, :2].set(b(1, 2))

    bf = lambda a: a.astype(BF)
    return {
        "w_des": bf(w_des), "w_tw": bf(w_tw), "w_num": bf(w_num), "w_cat": bf(w_cat),
        "b_enc": b_enc,
        "wi": bf(w(emb, emb)), "bi": b(1, emb),
        "g1w": bf(g1w), "g1as": bf(g1as), "g1ad": bf(g1ad), "g1b": g1b,
        "g2w": bf(g2w), "g2as": bf(g2as), "g2ad": bf(g2ad), "g2b": g2b,
        "w1": bf(w_o1), "b1": b_o1, "w2": bf(w_o2), "b2": b_o2,
    }


def edge_index_to_adj(edge_index, num_nodes):
    """Dense adj[dst, src] = 1 (bf16) with exactly one self loop per node,
    matching GATConv's remove_self_loops + add_self_loops.
    NOTE: duplicate edges collapse to one; out-of-range indices are dropped."""
    src, dst = edge_index[0], edge_index[1]
    adj = jnp.zeros((num_nodes, num_nodes), jnp.bfloat16)
    adj = adj.at[dst, src].set(1.0)
    idx = jnp.arange(num_nodes)
    adj = adj.at[idx, idx].set(1.0)
    return adj


def _vmem_limit_bytes():
    """Size the VMEM budget from the actual chip (64 MiB on v7x, 128 MiB on
    v5e/v6e) instead of hard-coding; fall back to the compiler default."""
    try:
        return int(pltpu.get_tpu_info().vmem_capacity_bytes) * 3 // 4
    except Exception:
        return None


# --------------------------------- forward ---------------------------------- #

@jax.jit
def botgat_forward(params, des, tweet, num_prop, cat_prop, edge_index, edge_type):
    del edge_type  # unused by the PyTorch forward as well
    n = des.shape[0]
    num_pad = params["w_num"].shape[0]
    cat_pad = params["w_cat"].shape[0]

    # only the two tiny property matrices get wrapper-side padding (negligible);
    # des / tweet stream straight into the kernel -> no concat+pad HBM round trip
    num_p = jnp.pad(num_prop, ((0, 0), (0, num_pad - num_prop.shape[1])))
    cat_p = jnp.pad(cat_prop, ((0, 0), (0, cat_pad - cat_prop.shape[1])))
    adj = edge_index_to_adj(edge_index, n)

    args = (des, tweet, num_p, cat_p, adj,
            params["w_des"], params["w_tw"], params["w_num"], params["w_cat"],
            params["b_enc"], params["wi"], params["bi"],
            params["g1w"], params["g1as"], params["g1ad"], params["g1b"],
            params["g2w"], params["g2as"], params["g2ad"], params["g2b"],
            params["w1"], params["b1"], params["w2"], params["b2"])

    k_enc = des.shape[1] + tweet.shape[1] + num_pad + cat_pad
    flops = int(2 * n * k_enc * EMB                 # encoder matmuls
                + 2 * n * EMB * EMB * 5             # input, gat1 W, gat1->gat2 W, out1, out2
                + 2 * 2 * n * n * EMB               # two GAT aggregations
                + 2 * 2 * (H1 + H2) * n * EMB)      # attention logits (tiny)
    bytes_accessed = int(n * EMB * 4
                         + sum(int(a.size) * a.dtype.itemsize for a in args))

    out = pl.pallas_call(
        botgat_kernel,
        out_shape=jax.ShapeDtypeStruct((n, EMB), jnp.float32),
        in_specs=[pl.BlockSpec(memory_space=pltpu.MemorySpace.VMEM)] * len(args),
        out_specs=pl.BlockSpec(memory_space=pltpu.MemorySpace.VMEM),
        compiler_params=pltpu.CompilerParams(vmem_limit_bytes=_vmem_limit_bytes()),
        cost_estimate=pl.CostEstimate(flops=flops,
                                      transcendentals=int((H1 + H2) * n * n),
                                      bytes_accessed=bytes_accessed),
    )(*args)
    return out[:, :2]


# ----------------------------------- main ----------------------------------- #

if __name__ == "__main__":
    N = 8
    DES, TWEET, NUM_P, CAT_P = 768, 768, 6, 11

    key = jax.random.PRNGKey(0)
    kp, kd, kt, kn, kc = jax.random.split(key, 5)

    params = init_params(kp)

    des = jax.random.normal(kd, (N, DES), jnp.float32)
    tweet = jax.random.normal(kt, (N, TWEET), jnp.float32)
    num_prop = jax.random.normal(kn, (N, NUM_P), jnp.float32)
    cat_prop = jax.random.normal(kc, (N, CAT_P), jnp.float32)

    # small deterministic directed graph (row 0 = src, row 1 = dst)
    edge_index = jnp.array(
        [[0, 1, 2, 3, 4, 5, 6, 7, 0, 2, 4, 6],
         [1, 2, 3, 4, 5, 6, 7, 0, 4, 6, 0, 2]], dtype=jnp.int32)
    edge_type = jnp.zeros((edge_index.shape[1],), dtype=jnp.int32)

    out = botgat_forward(params, des, tweet, num_prop, cat_prop,
                         edge_index, edge_type)
    jax.block_until_ready(out)
    assert out.shape == (N, 2) and out.dtype == jnp.float32
    assert bool(jnp.all(jnp.isfinite(out)))
    print("KERNEL_OK")
</pallas_src>

<mosaic_0001>
module attributes {stable_mosaic.version = 11 : i64} {
  func.func @botgat_kernel(%arg0: memref<8x768xf32, #tpu.memory_space<vmem>>, %arg1: memref<8x768xf32, #tpu.memory_space<vmem>>, %arg2: memref<8x8xf32, #tpu.memory_space<vmem>>, %arg3: memref<8x16xf32, #tpu.memory_space<vmem>>, %arg4: memref<8x8xbf16, #tpu.memory_space<vmem>>, %arg5: memref<768x128xbf16, #tpu.memory_space<vmem>>, %arg6: memref<768x128xbf16, #tpu.memory_space<vmem>>, %arg7: memref<8x128xbf16, #tpu.memory_space<vmem>>, %arg8: memref<16x128xbf16, #tpu.memory_space<vmem>>, %arg9: memref<1x128xf32, #tpu.memory_space<vmem>>, %arg10: memref<128x128xbf16, #tpu.memory_space<vmem>>, %arg11: memref<1x128xf32, #tpu.memory_space<vmem>>, %arg12: memref<4x128x32xbf16, #tpu.memory_space<vmem>>, %arg13: memref<4x1x32xbf16, #tpu.memory_space<vmem>>, %arg14: memref<4x1x32xbf16, #tpu.memory_space<vmem>>, %arg15: memref<4x1x32xf32, #tpu.memory_space<vmem>>, %arg16: memref<4x32x128xbf16, #tpu.memory_space<vmem>>, %arg17: memref<1x1x128xbf16, #tpu.memory_space<vmem>>, %arg18: memref<1x1x128xbf16, #tpu.memory_space<vmem>>, %arg19: memref<1x128xf32, #tpu.memory_space<vmem>>, %arg20: memref<128x128xbf16, #tpu.memory_space<vmem>>, %arg21: memref<1x128xf32, #tpu.memory_space<vmem>>, %arg22: memref<128x128xbf16, #tpu.memory_space<vmem>>, %arg23: memref<1x128xf32, #tpu.memory_space<vmem>>, %arg24: memref<8x128xf32, #tpu.memory_space<vmem>>) attributes {dimension_semantics = [], scalar_prefetch = 0 : i64, scratch_operands = 0 : i64, tpu.core_type = #tpu.core_type<tc>} {
    %c0 = arith.constant 0 : index
    %c0_0 = arith.constant 0 : index
    %0 = vector.load %arg0[%c0, %c0_0] : memref<8x768xf32, #tpu.memory_space<vmem>>, vector<8x768xf32>
    %c0_1 = arith.constant 0 : index
    %c0_2 = arith.constant 0 : index
    %1 = vector.load %arg5[%c0_1, %c0_2] : memref<768x128xbf16, #tpu.memory_space<vmem>>, vector<768x128xbf16>
    %2 = arith.truncf %0 : vector<8x768xf32> to vector<8x768xbf16>
    %cst = arith.constant dense<0.000000e+00> : vector<8x128xf32>
    %3 = tpu.matmul %2, %1, %cst {dimension_numbers = #tpu.dot_dimension_numbers<[1], [0], [0], [1], [0, 0, 1, 1], [], []>} : vector<8x768xbf16>, vector<768x128xbf16>, vector<8x128xf32> -> vector<8x128xf32>
    %c0_3 = arith.constant 0 : index
    %c0_4 = arith.constant 0 : index
    %4 = vector.load %arg1[%c0_3, %c0_4] : memref<8x768xf32, #tpu.memory_space<vmem>>, vector<8x768xf32>
    %c0_5 = arith.constant 0 : index
    %c0_6 = arith.constant 0 : index
    %5 = vector.load %arg6[%c0_5, %c0_6] : memref<768x128xbf16, #tpu.memory_space<vmem>>, vector<768x128xbf16>
    %6 = arith.truncf %4 : vector<8x768xf32> to vector<8x768xbf16>
    %cst_7 = arith.constant dense<0.000000e+00> : vector<8x128xf32>
    %7 = tpu.matmul %6, %5, %cst_7 {dimension_numbers = #tpu.dot_dimension_numbers<[1], [0], [0], [1], [0, 0, 1, 1], [], []>} : vector<8x768xbf16>, vector<768x128xbf16>, vector<8x128xf32> -> vector<8x128xf32>
    %8 = arith.addf %3, %7 : vector<8x128xf32>
    %c0_8 = arith.constant 0 : index
    %c0_9 = arith.constant 0 : index
    %9 = vector.load %arg2[%c0_8, %c0_9] : memref<8x8xf32, #tpu.memory_space<vmem>>, vector<8x8xf32>
    %c0_10 = arith.constant 0 : index
    %c0_11 = arith.constant 0 : index
    %10 = vector.load %arg7[%c0_10, %c0_11] : memref<8x128xbf16, #tpu.memory_space<vmem>>, vector<8x128xbf16>
    %11 = arith.truncf %9 : vector<8x8xf32> to vector<8x8xbf16>
    %cst_12 = arith.constant dense<0.000000e+00> : vector<8x128xf32>
    %12 = tpu.matmul %11, %10, %cst_12 {dimension_numbers = #tpu.dot_dimension_numbers<[1], [0], [0], [1], [0, 0, 1, 1], [], []>} : vector<8x8xbf16>, vector<8x128xbf16>, vector<8x128xf32> -> vector<8x128xf32>
    %13 = arith.addf %8, %12 : vector<8x128xf32>
    %c0_13 = arith.constant 0 : index
    %c0_14 = arith.constant 0 : index
    %14 = vector.load %arg3[%c0_13, %c0_14] : memref<8x16xf32, #tpu.memory_space<vmem>>, vector<8x16xf32>
    %c0_15 = arith.constant 0 : index
    %c0_16 = arith.constant 0 : index
    %15 = vector.load %arg8[%c0_15, %c0_16] : memref<16x128xbf16, #tpu.memory_space<vmem>>, vector<16x128xbf16>
    %16 = arith.truncf %14 : vector<8x16xf32> to vector<8x16xbf16>
    %cst_17 = arith.constant dense<0.000000e+00> : vector<8x128xf32>
    %17 = tpu.matmul %16, %15, %cst_17 {dimension_numbers = #tpu.dot_dimension_numbers<[1], [0], [0], [1], [0, 0, 1, 1], [], []>} : vector<8x16xbf16>, vector<16x128xbf16>, vector<8x128xf32> -> vector<8x128xf32>
    %18 = arith.addf %13, %17 : vector<8x128xf32>
    %c0_18 = arith.constant 0 : index
    %c0_19 = arith.constant 0 : index
    %19 = vector.load %arg9[%c0_18, %c0_19] : memref<1x128xf32, #tpu.memory_space<vmem>>, vector<1x128xf32>
    %20 = vector.broadcast %19 : vector<1x128xf32> to vector<8x128xf32>
    %21 = arith.addf %18, %20 : vector<8x128xf32>
    %cst_20 = arith.constant 0.000000e+00 : f32
    %22 = vector.broadcast %cst_20 : f32 to vector<8x128xf32>
    %23 = arith.cmpf ogt, %21, %22 : vector<8x128xf32>
    %cst_21 = arith.constant 0.00999999977 : f32
    %24 = vector.broadcast %cst_21 : f32 to vector<8x128xf32>
    %25 = arith.mulf %24, %21 : vector<8x128xf32>
    %26 = arith.select %23, %21, %25 : vector<8x128xi1>, vector<8x128xf32>
    %c0_22 = arith.constant 0 : index
    %c0_23 = arith.constant 0 : index
    %27 = vector.load %arg10[%c0_22, %c0_23] : memref<128x128xbf16, #tpu.memory_space<vmem>>, vector<128x128xbf16>
    %28 = arith.truncf %26 : vector<8x128xf32> to vector<8x128xbf16>
    %cst_24 = arith.constant dense<0.000000e+00> : vector<8x128xf32>
    %29 = tpu.matmul %28, %27, %cst_24 {dimension_numbers = #tpu.dot_dimension_numbers<[1], [0], [0], [1], [0, 0, 1, 1], [], []>} : vector<8x128xbf16>, vector<128x128xbf16>, vector<8x128xf32> -> vector<8x128xf32>
    %c0_25 = arith.constant 0 : index
    %c0_26 = arith.constant 0 : index
    %30 = vector.load %arg11[%c0_25, %c0_26] : memref<1x128xf32, #tpu.memory_space<vmem>>, vector<1x128xf32>
    %31 = vector.broadcast %30 : vector<1x128xf32> to vector<8x128xf32>
    %32 = arith.addf %29, %31 : vector<8x128xf32>
    %cst_27 = arith.constant 0.000000e+00 : f32
    %33 = vector.broadcast %cst_27 : f32 to vector<8x128xf32>
    %34 = arith.cmpf ogt, %32, %33 : vector<8x128xf32>
    %cst_28 = arith.constant 0.00999999977 : f32
    %35 = vector.broadcast %cst_28 : f32 to vector<8x128xf32>
    %36 = arith.mulf %35, %32 : vector<8x128xf32>
    %37 = arith.select %34, %32, %36 : vector<8x128xi1>, vector<8x128xf32>
    %c0_29 = arith.constant 0 : index
    %c0_30 = arith.constant 0 : index
    %38 = vector.load %arg4[%c0_29, %c0_30] : memref<8x8xbf16, #tpu.memory_space<vmem>>, vector<8x8xbf16>
    %cst_31 = arith.constant 0.000000e+00 : bf16
    %39 = vector.broadcast %cst_31 : bf16 to vector<8x8xbf16>
    %40 = arith.cmpf ogt, %38, %39 : vector<8x8xbf16>
    %41 = arith.truncf %37 : vector<8x128xf32> to vector<8x128xbf16>
    %42 = vector.shape_cast %41 : vector<8x128xbf16> to vector<1x8x128xbf16>
    %43 = vector.shape_cast %42 : vector<1x8x128xbf16> to vector<1x8x128xbf16>
    %44 = vector.broadcast %43 : vector<1x8x128xbf16> to vector<4x8x128xbf16>
    %c0_32 = arith.constant 0 : index
    %c0_33 = arith.constant 0 : index
    %c0_34 = arith.constant 0 : index
    %45 = vector.load %arg12[%c0_32, %c0_33, %c0_34] : memref<4x128x32xbf16, #tpu.memory_space<vmem>>, vector<4x128x32xbf16>
    "tpu.trace_start"() <{level = 10 : i32, message = "hnk,hkc->hnc"}> : () -> ()
    %cst_35 = arith.constant dense<0.000000e+00> : vector<4x8x32xf32>
    %46 = tpu.matmul %44, %45, %cst_35 {dimension_numbers = #tpu.dot_dimension_numbers<[2], [1], [1], [2], [0, 0, 0, 1, 1, 2], [0], [0]>} : vector<4x8x128xbf16>, vector<4x128x32xbf16>, vector<4x8x32xf32> -> vector<4x8x32xf32>
    "tpu.trace_stop"() : () -> ()
    %47 = arith.truncf %46 : vector<4x8x32xf32> to vector<4x8x32xbf16>
    %c0_36 = arith.constant 0 : index
    %c0_37 = arith.constant 0 : index
    %c0_38 = arith.constant 0 : index
    %48 = vector.load %arg13[%c0_36, %c0_37, %c0_38] : memref<4x1x32xbf16, #tpu.memory_space<vmem>>, vector<4x1x32xbf16>
    %c0_39 = arith.constant 0 : index
    %c0_40 = arith.constant 0 : index
    %c0_41 = arith.constant 0 : index
    %49 = vector.load %arg14[%c0_39, %c0_40, %c0_41] : memref<4x1x32xbf16, #tpu.memory_space<vmem>>, vector<4x1x32xbf16>
    "tpu.trace_start"() <{level = 10 : i32, message = "hnc,hyc->hny"}> : () -> ()
    %cst_42 = arith.constant dense<0.000000e+00> : vector<4x8x1xf32>
    %50 = tpu.matmul %47, %49, %cst_42 {dimension_numbers = #tpu.dot_dimension_numbers<[2], [2], [1], [1], [0, 0, 0, 1, 1, 1], [0], [0]>} : vector<4x8x32xbf16>, vector<4x1x32xbf16>, vector<4x8x1xf32> -> vector<4x8x1xf32>
    "tpu.trace_stop"() : () -> ()
    "tpu.trace_start"() <{level = 10 : i32, message = "hyc,hnc->hyn"}> : () -> ()
    %cst_43 = arith.constant dense<0.000000e+00> : vector<4x1x8xf32>
    %51 = tpu.matmul %48, %47, %cst_43 {dimension_numbers = #tpu.dot_dimension_numbers<[2], [2], [1], [1], [0, 0, 0, 1, 1, 1], [0], [0]>} : vector<4x1x32xbf16>, vector<4x8x32xbf16>, vector<4x1x8xf32> -> vector<4x1x8xf32>
    "tpu.trace_stop"() : () -> ()
    %52 = vector.broadcast %50 : vector<4x8x1xf32> to vector<4x8x8xf32>
    %53 = vector.broadcast %51 : vector<4x1x8xf32> to vector<4x8x8xf32>
    %54 = arith.addf %52, %53 : vector<4x8x8xf32>
    %55 = vector.shape_cast %40 : vector<8x8xi1> to vector<1x8x8xi1>
    %cst_44 = arith.constant 0.000000e+00 : f32
    %56 = vector.broadcast %cst_44 : f32 to vector<4x8x8xf32>
    %57 = arith.cmpf ogt, %54, %56 : vector<4x8x8xf32>
    %cst_45 = arith.constant 2.000000e-01 : f32
    %58 = vector.broadcast %cst_45 : f32 to vector<4x8x8xf32>
    %59 = arith.mulf %58, %54 : vector<4x8x8xf32>
    %60 = arith.select %57, %54, %59 : vector<4x8x8xi1>, vector<4x8x8xf32>
    %cst_46 = arith.constant -1.000000e+30 : f32
    %61 = vector.shape_cast %55 : vector<1x8x8xi1> to vector<1x8x8xi1>
    %62 = vector.broadcast %61 : vector<1x8x8xi1> to vector<4x8x8xi1>
    %63 = vector.broadcast %cst_46 : f32 to vector<4x8x8xf32>
    %64 = arith.select %62, %60, %63 : vector<4x8x8xi1>, vector<4x8x8xf32>
    %cst_47 = arith.constant dense<0xFF800000> : vector<4x8xf32>
    %65 = vector.multi_reduction <maximumf>, %64, %cst_47 [2] : vector<4x8x8xf32> to vector<4x8xf32>
    %66 = vector.shape_cast %65 : vector<4x8xf32> to vector<4x8x1xf32>
    %67 = vector.broadcast %66 : vector<4x8x1xf32> to vector<4x8x8xf32>
    %68 = arith.subf %64, %67 : vector<4x8x8xf32>
    %69 = math.exp %68 : vector<4x8x8xf32>
    %cst_48 = arith.constant dense<0.000000e+00> : vector<4x8xf32>
    %70 = vector.multi_reduction <add>, %69, %cst_48 [2] : vector<4x8x8xf32> to vector<4x8xf32>
    %71 = vector.shape_cast %70 : vector<4x8xf32> to vector<4x8x1xf32>
    %72 = arith.truncf %69 : vector<4x8x8xf32> to vector<4x8x8xbf16>
    "tpu.trace_start"() <{level = 10 : i32, message = "hij,hjc->hic"}> : () -> ()
    %cst_49 = arith.constant dense<0.000000e+00> : vector<4x8x32xf32>
    %73 = tpu.matmul %72, %47, %cst_49 {dimension_numbers = #tpu.dot_dimension_numbers<[2], [1], [1], [2], [0, 0, 0, 1, 1, 2], [0], [0]>} : vector<4x8x8xbf16>, vector<4x8x32xbf16>, vector<4x8x32xf32> -> vector<4x8x32xf32>
    "tpu.trace_stop"() : () -> ()
    %74 = tpu.reciprocal %71 {approx = true} : vector<4x8x1xf32> -> vector<4x8x1xf32>
    %75 = vector.broadcast %74 : vector<4x8x1xf32> to vector<4x8x32xf32>
    %76 = arith.mulf %73, %75 : vector<4x8x32xf32>
    %c0_50 = arith.constant 0 : index
    %c0_51 = arith.constant 0 : index
    %c0_52 = arith.constant 0 : index
    %77 = vector.load %arg15[%c0_50, %c0_51, %c0_52] : memref<4x1x32xf32, #tpu.memory_space<vmem>>, vector<4x1x32xf32>
    %78 = vector.broadcast %77 : vector<4x1x32xf32> to vector<4x8x32xf32>
    %79 = arith.addf %76, %78 : vector<4x8x32xf32>
    %80 = arith.truncf %79 : vector<4x8x32xf32> to vector<4x8x32xbf16>
    %c0_53 = arith.constant 0 : index
    %c0_54 = arith.constant 0 : index
    %c0_55 = arith.constant 0 : index
    %81 = vector.load %arg16[%c0_53, %c0_54, %c0_55] : memref<4x32x128xbf16, #tpu.memory_space<vmem>>, vector<4x32x128xbf16>
    "tpu.trace_start"() <{level = 10 : i32, message = "hnc,hcd->hnd"}> : () -> ()
    %cst_56 = arith.constant dense<0.000000e+00> : vector<4x8x128xf32>
    %82 = tpu.matmul %80, %81, %cst_56 {dimension_numbers = #tpu.dot_dimension_numbers<[2], [1], [1], [2], [0, 0, 0, 1, 1, 2], [0], [0]>} : vector<4x8x32xbf16>, vector<4x32x128xbf16>, vector<4x8x128xf32> -> vector<4x8x128xf32>
    "tpu.trace_stop"() : () -> ()
    %cst_57 = arith.constant dense<0.000000e+00> : vector<8x128xf32>
    %83 = vector.multi_reduction <add>, %82, %cst_57 [0] : vector<4x8x128xf32> to vector<8x128xf32>
    %84 = arith.truncf %83 : vector<8x128xf32> to vector<8x128xbf16>
    %85 = vector.shape_cast %84 : vector<8x128xbf16> to vector<1x8x128xbf16>
    %c0_58 = arith.constant 0 : index
    %c0_59 = arith.constant 0 : index
    %c0_60 = arith.constant 0 : index
    %86 = vector.load %arg17[%c0_58, %c0_59, %c0_60] : memref<1x1x128xbf16, #tpu.memory_space<vmem>>, vector<1x1x128xbf16>
    %c0_61 = arith.constant 0 : index
    %c0_62 = arith.constant 0 : index
    %c0_63 = arith.constant 0 : index
    %87 = vector.load %arg18[%c0_61, %c0_62, %c0_63] : memref<1x1x128xbf16, #tpu.memory_space<vmem>>, vector<1x1x128xbf16>
    "tpu.trace_start"() <{level = 10 : i32, message = "hnc,hyc->hny"}> : () -> ()
    %cst_64 = arith.constant dense<0.000000e+00> : vector<1x8x1xf32>
    %88 = tpu.matmul %85, %87, %cst_64 {dimension_numbers = #tpu.dot_dimension_numbers<[2], [2], [1], [1], [0, 0, 0, 1, 1, 1], [0], [0]>} : vector<1x8x128xbf16>, vector<1x1x128xbf16>, vector<1x8x1xf32> -> vector<1x8x1xf32>
    "tpu.trace_stop"() : () -> ()
    "tpu.trace_start"() <{level = 10 : i32, message = "hyc,hnc->hyn"}> : () -> ()
    %cst_65 = arith.constant dense<0.000000e+00> : vector<1x1x8xf32>
    %89 = tpu.matmul %86, %85, %cst_65 {dimension_numbers = #tpu.dot_dimension_numbers<[2], [2], [1], [1], [0, 0, 0, 1, 1, 1], [0], [0]>} : vector<1x1x128xbf16>, vector<1x8x128xbf16>, vector<1x1x8xf32> -> vector<1x1x8xf32>
    "tpu.trace_stop"() : () -> ()
    %90 = vector.broadcast %88 : vector<1x8x1xf32> to vector<1x8x8xf32>
    %91 = vector.broadcast %89 : vector<1x1x8xf32> to vector<1x8x8xf32>
    %92 = arith.addf %90, %91 : vector<1x8x8xf32>
    %93 = vector.shape_cast %40 : vector<8x8xi1> to vector<1x8x8xi1>
    %cst_66 = arith.constant 0.000000e+00 : f32
    %94 = vector.broadcast %cst_66 : f32 to vector<1x8x8xf32>
    %95 = arith.cmpf ogt, %92, %94 : vector<1x8x8xf32>
    %cst_67 = arith.constant 2.000000e-01 : f32
    %96 = vector.broadcast %cst_67 : f32 to vector<1x8x8xf32>
    %97 = arith.mulf %96, %92 : vector<1x8x8xf32>
    %98 = arith.select %95, %92, %97 : vector<1x8x8xi1>, vector<1x8x8xf32>
    %cst_68 = arith.constant -1.000000e+30 : f32
    %99 = vector.broadcast %cst_68 : f32 to vector<1x8x8xf32>
    %100 = arith.select %93, %98, %99 : vector<1x8x8xi1>, vector<1x8x8xf32>
    %cst_69 = arith.constant dense<0xFF800000> : vector<1x8xf32>
    %101 = vector.multi_reduction <maximumf>, %100, %cst_69 [2] : vector<1x8x8xf32> to vector<1x8xf32>
    %102 = vector.shape_cast %101 : vector<1x8xf32> to vector<1x8x1xf32>
    %103 = vector.broadcast %102 : vector<1x8x1xf32> to vector<1x8x8xf32>
    %104 = arith.subf %100, %103 : vector<1x8x8xf32>
    %105 = math.exp %104 : vector<1x8x8xf32>
    %cst_70 = arith.constant dense<0.000000e+00> : vector<1x8xf32>
    %106 = vector.multi_reduction <add>, %105, %cst_70 [2] : vector<1x8x8xf32> to vector<1x8xf32>
    %107 = vector.shape_cast %106 : vector<1x8xf32> to vector<1x8x1xf32>
    %108 = arith.truncf %105 : vector<1x8x8xf32> to vector<1x8x8xbf16>
    "tpu.trace_start"() <{level = 10 : i32, message = "hij,hjc->hic"}> : () -> ()
    %cst_71 = arith.constant dense<0.000000e+00> : vector<1x8x128xf32>
    %109 = tpu.matmul %108, %85, %cst_71 {dimension_numbers = #tpu.dot_dimension_numbers<[2], [1], [1], [2], [0, 0, 0, 1, 1, 2], [0], [0]>} : vector<1x8x8xbf16>, vector<1x8x128xbf16>, vector<1x8x128xf32> -> vector<1x8x128xf32>
    "tpu.trace_stop"() : () -> ()
    %110 = tpu.reciprocal %107 {approx = true} : vector<1x8x1xf32> -> vector<1x8x1xf32>
    %111 = vector.broadcast %110 : vector<1x8x1xf32> to vector<1x8x128xf32>
    %112 = arith.mulf %109, %111 : vector<1x8x128xf32>
    %113 = vector.shape_cast %112 : vector<1x8x128xf32> to vector<8x128xf32>
    %c0_72 = arith.constant 0 : index
    %c0_73 = arith.constant 0 : index
    %114 = vector.load %arg19[%c0_72, %c0_73] : memref<1x128xf32, #tpu.memory_space<vmem>>, vector<1x128xf32>
    %115 = vector.broadcast %114 : vector<1x128xf32> to vector<8x128xf32>
    %116 = arith.addf %113, %115 : vector<8x128xf32>
    %c0_74 = arith.constant 0 : index
    %c0_75 = arith.constant 0 : index
    %117 = vector.load %arg20[%c0_74, %c0_75] : memref<128x128xbf16, #tpu.memory_space<vmem>>, vector<128x128xbf16>
    %118 = arith.truncf %116 : vector<8x128xf32> to vector<8x128xbf16>
    %cst_76 = arith.constant dense<0.000000e+00> : vector<8x128xf32>
    %119 = tpu.matmul %118, %117, %cst_76 {dimension_numbers = #tpu.dot_dimension_numbers<[1], [0], [0], [1], [0, 0, 1, 1], [], []>} : vector<8x128xbf16>, vector<128x128xbf16>, vector<8x128xf32> -> vector<8x128xf32>
    %c0_77 = arith.constant 0 : index
    %c0_78 = arith.constant 0 : index
    %120 = vector.load %arg21[%c0_77, %c0_78] : memref<1x128xf32, #tpu.memory_space<vmem>>, vector<1x128xf32>
    %121 = vector.broadcast %120 : vector<1x128xf32> to vector<8x128xf32>
    %122 = arith.addf %119, %121 : vector<8x128xf32>
    %cst_79 = arith.constant 0.000000e+00 : f32
    %123 = vector.broadcast %cst_79 : f32 to vector<8x128xf32>
    %124 = arith.cmpf ogt, %122, %123 : vector<8x128xf32>
    %cst_80 = arith.constant 0.00999999977 : f32
    %125 = vector.broadcast %cst_80 : f32 to vector<8x128xf32>
    %126 = arith.mulf %125, %122 : vector<8x128xf32>
    %127 = arith.select %124, %122, %126 : vector<8x128xi1>, vector<8x128xf32>
    %c0_81 = arith.constant 0 : index
    %c0_82 = arith.constant 0 : index
    %128 = vector.load %arg22[%c0_81, %c0_82] : memref<128x128xbf16, #tpu.memory_space<vmem>>, vector<128x128xbf16>
    %129 = arith.truncf %127 : vector<8x128xf32> to vector<8x128xbf16>
    %cst_83 = arith.constant dense<0.000000e+00> : vector<8x128xf32>
    %130 = tpu.matmul %129, %128, %cst_83 {dimension_numbers = #tpu.dot_dimension_numbers<[1], [0], [0], [1], [0, 0, 1, 1], [], []>} : vector<8x128xbf16>, vector<128x128xbf16>, vector<8x128xf32> -> vector<8x128xf32>
    %c0_84 = arith.constant 0 : index
    %c0_85 = arith.constant 0 : index
    %131 = vector.load %arg23[%c0_84, %c0_85] : memref<1x128xf32, #tpu.memory_space<vmem>>, vector<1x128xf32>
    %132 = vector.broadcast %131 : vector<1x128xf32> to vector<8x128xf32>
    %133 = arith.addf %130, %132 : vector<8x128xf32>
    %c0_86 = arith.constant 0 : index
    %c0_87 = arith.constant 0 : index
    %134 = vector.load %arg24[%c0_86, %c0_87] : memref<8x128xf32, #tpu.memory_space<vmem>>, vector<8x128xf32>
    tpu.vector_store %arg24[%c0_86, %c0_87], %133 {strides = array<i32>} : memref<8x128xf32, #tpu.memory_space<vmem>>, vector<8x128xf32>,
    return
  }
}

</mosaic_0001>

<bundles_post_ra>
// kernel: botgat_forward.1
= control target key start
LH: loop header
LB: loop body
LE: loop exit
PB: predicated region body
PF: predicated region fallthrough
CT: control target
= control target key end

     0   :  { %vm1119_vm0 = vcmask 1043456   ;;  %vm3983_vm1 = vmmov 0   ;;  %vm1115_vm2 = vcmask 64512   ;;  %vm1174_vm3 = vcmask 130048   ;;  %s4914_s6 = inlined_call_operand.vmem [shape: bf16[768,128], index: 6, kind: input, shape index: {}]   ;;  %s4915_s1 = inlined_call_operand.vmem [shape: f32[8,768], index: 1, kind: input, shape index: {}]   ;;  %s4916_s5 = inlined_call_operand.vmem [shape: bf16[768,128], index: 5, kind: input, shape index: {}]   ;;  %s4917_s0 = inlined_call_operand.vmem [shape: f32[8,768], index: 0, kind: input, shape index: {}]   ;;  %s4918_s7 = inlined_call_operand.vmem [shape: bf16[8,128], index: 7, kind: input, shape index: {}]   ;;  %s4919_s8 = inlined_call_operand.vmem [shape: bf16[16,128], index: 8, kind: input, shape index: {}]   ;;  %s4920_s2 = inlined_call_operand.vmem [shape: f32[8,8], index: 2, kind: input, shape index: {}]   ;;  %s4921_s3 = inlined_call_operand.vmem [shape: f32[8,16], index: 3, kind: input, shape index: {}]   ;;  %s4922_s10 = inlined_call_operand.vmem [shape: bf16[128,128], index: 10, kind: input, shape index: {}]   ;;  %s4923_s12 = inlined_call_operand.vmem [shape: bf16[4,128,32], index: 12, kind: input, shape index: {}]   ;;  %s4924_s9 = inlined_call_operand.vmem [shape: f32[1,128], index: 9, kind: input, shape index: {}]   ;;  %s4925_s11 = inlined_call_operand.vmem [shape: f32[1,128], index: 11, kind: input, shape index: {}]   ;;  %s4926_s14 = inlined_call_operand.vmem [shape: bf16[4,1,32], index: 14, kind: input, shape index: {}]   ;;  %s4927_s13 = inlined_call_operand.vmem [shape: bf16[4,1,32], index: 13, kind: input, shape index: {}]   ;;  %s4928_s4 = inlined_call_operand.vmem [shape: bf16[8,8], index: 4, kind: input, shape index: {}]   ;;  %s4929_s16 = inlined_call_operand.vmem [shape: bf16[4,32,128], index: 16, kind: input, shape index: {}]   ;;  %s4930_s15 = inlined_call_operand.vmem [shape: f32[4,1,32], index: 15, kind: input, shape index: {}]   ;;  %s4931_s18 = inlined_call_operand.vmem [shape: bf16[1,1,128], index: 18, kind: input, shape index: {}]   ;;  %s4932_s17 = inlined_call_operand.vmem [shape: bf16[1,1,128], index: 17, kind: input, shape index: {}]   ;;  %s4933_s20 = inlined_call_operand.vmem [shape: bf16[128,128], index: 20, kind: input, shape index: {}]   ;;  %s4934_s22 = inlined_call_operand.vmem [shape: bf16[128,128], index: 22, kind: input, shape index: {}]   ;;  %s4935_s19 = inlined_call_operand.vmem [shape: f32[1,128], index: 19, kind: input, shape index: {}]   ;;  %s4936_s21 = inlined_call_operand.vmem [shape: f32[1,128], index: 21, kind: input, shape index: {}]   ;;  %s4937_s23 = inlined_call_operand.vmem [shape: f32[1,128], index: 23, kind: input, shape index: {}]   ;;  %s4938_s24 = inlined_call_operand.vmem [shape: f32[8,128], index: 24, kind: output, shape index: {}]  }
   0x1   :  { %4944 = sst [smem:[#allocation2_spill]] %s4914_s6  ;;  %vm1776_vm6 = vcmask 261120  }
   0x2   :  { %4945 = sst [smem:[#allocation3_spill]] %s4915_s1 }
   0x3   :  { %4946 = sst [smem:[#allocation4_spill]] %s4916_s5 }
   0x4   :  { %4947 = sst [smem:[#allocation5_spill]] %s4917_s0 }
   0x5   :  { %4948 = sst [smem:[#allocation6_spill]] %s4918_s7 }
   0x6   :  { %4949 = sst [smem:[#allocation7_spill]] %s4919_s8 }
   0x7   :  { %4950 = sst [smem:[#allocation8_spill]] %s4920_s2 }
   0x8   :  { %4951 = sst [smem:[#allocation9_spill]] %s4921_s3 }
   0x9   :  { %4952 = sst [smem:[#allocation10_spill]] %s4922_s10 }
   0xa   :  { %s4953_s27 = sld [smem:[#allocation2_spill]] }
   0xb   :  { %s4954_s25 = sld [smem:[#allocation3_spill]] }
   0xc   :  { %s4955_s3 = sld [smem:[#allocation4_spill]] }
   0xd   :  { %s4956_s1 = sld [smem:[#allocation5_spill]] }
   0xe   :  { %s4957_s7 = sld [smem:[#allocation6_spill]] }
   0xf   :  { %s4959_s2 = sld [smem:[#allocation8_spill]] }
  0x10   :  { %v3801_v0 = vld [vmem:[%s4953_s27 + $0x78] sm:$0xff]   ;;  %v3805_v4 = vld [vmem:[%s4953_s27 + $0x70] sm:$0xff]   ;;  %v3809_v8 = vld [vmem:[%s4953_s27 + $0x68] sm:$0xff]   ;;  %s4960_s0 = sld [smem:[#allocation9_spill]] }
  0x11   :  { %v3802_v1 = vld [vmem:[%s4953_s27 + $0xf8] sm:$0xff]   ;;  %3281 = vmatprep.subr.bf16.mxu0 %v3801_v0  ;;  %v3806_v5 = vld [vmem:[%s4953_s27 + $0xf0] sm:$0xff]   ;;  %v3810_v9 = vld [vmem:[%s4953_s27 + $0xe8] sm:$0xff]   ;;  %s4961_s6 = sld [smem:[#allocation10_spill]] }
  0x12   :  { %v3803_v2 = vld [vmem:[%s4953_s27 + $0x38] sm:$0xff]   ;;  %3303 = vmatprep.subr.bf16.mxu1 %v3802_v1  ;;  %v3807_v6 = vld [vmem:[%s4953_s27 + $0x30] sm:$0xff]   ;;  %v3811_v10 = vld [vmem:[%s4953_s27 + $0x28] sm:$0xff]  }
  0x13   :  { %v3804_v3 = vld [vmem:[%s4953_s27 + $0xb8] sm:$0xff]   ;;  %3282 = vmatpush3.bf16.msra.mxu0 %v3803_v2  ;;  %v3808_v7 = vld [vmem:[%s4953_s27 + $0xb0] sm:$0xff]   ;;  %v3812_v11 = vld [vmem:[%s4953_s27 + $0xa8] sm:$0xff]  }
  0x14   :  { %3304 = vmatpush3.bf16.msra.mxu1 %v3804_v3  ;;  %3283 = vmatprep.subr.bf16.mxu0 %v3805_v4  ;;  %v3813_v12 = vld [vmem:[%s4953_s27 + $0x60] sm:$0xff]   ;;  %v3817_v16 = vld [vmem:[%s4953_s27 + $0x58] sm:$0xff]   ;;  %v3821_v20 = vld [vmem:[%s4953_s27 + $0x50] sm:$0xff]  }
  0x15   :  { %3305 = vmatprep.subr.bf16.mxu1 %v3806_v5  ;;  %v3814_v13 = vld [vmem:[%s4953_s27 + $0xe0] sm:$0xff]   ;;  %v3818_v17 = vld [vmem:[%s4953_s27 + $0xd8] sm:$0xff]   ;;  %v3822_v21 = vld [vmem:[%s4953_s27 + $0xd0] sm:$0xff]  }
  0x16   :  { %v3815_v14 = vld [vmem:[%s4953_s27 + $0x20] sm:$0xff]   ;;  %v3819_v18 = vld [vmem:[%s4953_s27 + $0x18] sm:$0xff]   ;;  %v3823_v22 = vld [vmem:[%s4953_s27 + $0x10] sm:$0xff]  }
  0x17   :  { %3284 = vmatpush3.bf16.msra.mxu0 %v3807_v6  ;;  %v3816_v15 = vld [vmem:[%s4953_s27 + $0xa0] sm:$0xff]   ;;  %v3820_v19 = vld [vmem:[%s4953_s27 + $0x98] sm:$0xff]   ;;  %v3824_v23 = vld [vmem:[%s4953_s27 + $0x90] sm:$0xff]  }
  0x18   :  { %3306 = vmatpush3.bf16.msra.mxu1 %v3808_v7  ;;  %3285 = vmatprep.subr.bf16.mxu0 %v3809_v8  ;;  %v3825_v24 = vld [vmem:[%s4953_s27 + $0x48] sm:$0xff]   ;;  %v3829_v28 = vld [vmem:[%s4953_s27 + $0x40] sm:$0xff]   ;;  %v191_v33 = vld [vmem:[%s4954_s25 + $0x18] sm:$0xff] }
  0x19   :  { %3307 = vmatprep.subr.bf16.mxu1 %v3810_v9  ;;  %v3826_v25 = vld [vmem:[%s4953_s27 + $0xc8] sm:$0xff]   ;;  %v3830_v29 = vld [vmem:[%s4953_s27 + $0xc0] sm:$0xff]   ;;  %v293_v36 = vpack.c.bf16 %v191_v33, %v191_v33  ;;  %v190_v38 = vld [vmem:[%s4954_s25 + $0x10] sm:$0xff] }
  0x1a   :  { %v3827_v26 = vld [vmem:[%s4953_s27 + $0x8] sm:$0xff]   ;;  %v3831_v30 = vld [vmem:[%s4953_s27] sm:$0xff]   ;;  %v292_v39 = vpack.c.bf16 %v190_v38, %v190_v38  ;;  %v3833_v40 = vld [vmem:[%s4953_s27 + $0x178] sm:$0xff]  }
  0x1b   :  { %3286 = vmatpush3.bf16.msra.mxu0 %v3811_v10  ;;  %v3828_v27 = vld [vmem:[%s4953_s27 + $0x88] sm:$0xff]   ;;  %v3832_v31 = vld [vmem:[%s4953_s27 + $0x80] sm:$0xff]   ;;  %656 = vmatprep.mubr.bf16.mxu1 %v293_v36  ;;  %v3834_v41 = vld [vmem:[%s4955_s3 + $0x78] sm:$0xff]  }
  0x1c   :  { %3308 = vmatpush3.bf16.msra.mxu1 %v3812_v11  ;;  %3287 = vmatprep.subr.bf16.mxu0 %v3813_v12  ;;  %v189_v32 = vld [vmem:[%s4954_s25 + $0x8] sm:$0xff]  ;;  %v188_v34 = vld [vmem:[%s4954_s25] sm:$0xff]  ;;  %v3835_v42 = vld [vmem:[%s4953_s27 + $0x138] sm:$0xff]  }
  0x1d   :  { %3309 = vmatprep.subr.bf16.mxu1 %v3814_v13  ;;  %v291_v35 = vpack.c.bf16 %v189_v32, %v189_v32  ;;  %v290_v37 = vpack.c.bf16 %v188_v34, %v188_v34  ;;  %v3836_v43 = vld [vmem:[%s4955_s3 + $0x38] sm:$0xff]   ;;  %v3837_v44 = vld [vmem:[%s4953_s27 + $0x170] sm:$0xff]   ;;  %v3841_v48 = vld [vmem:[%s4953_s27 + $0x168] sm:$0xff]  }
  0x1e   :  { %v3838_v45 = vld [vmem:[%s4955_s3 + $0x70] sm:$0xff]   ;;  %v3842_v49 = vld [vmem:[%s4955_s3 + $0x68] sm:$0xff]   ;;  %v3845_v52 = vld [vmem:[%s4953_s27 + $0x160] sm:$0xff]  }
  0x1f   :  { %3288 = vmatpush3.bf16.msra.mxu0 %v3815_v14  ;;  %616 = vmatprep.mubr.bf16.mxu0 %v291_v35  ;;  %v3839_v46 = vld [vmem:[%s4953_s27 + $0x130] sm:$0xff]   ;;  %v3843_v50 = vld [vmem:[%s4953_s27 + $0x128] sm:$0xff]   ;;  %v3846_v53 = vld [vmem:[%s4955_s3 + $0x60] sm:$0xff]  }
  0x20   :  { %3310 = vmatpush3.bf16.msra.mxu1 %v3816_v15  ;;  %3289 = vmatprep.subr.bf16.mxu0 %v3817_v16  ;;  %v3840_v47 = vld [vmem:[%s4955_s3 + $0x30] sm:$0xff]   ;;  %v3844_v51 = vld [vmem:[%s4955_s3 + $0x28] sm:$0xff]   ;;  %v3847_v54 = vld [vmem:[%s4953_s27 + $0x120] sm:$0xff]  }
  0x21   :  { %3311 = vmatprep.subr.bf16.mxu1 %v3818_v17  ;;  %v3848_v55 = vld [vmem:[%s4955_s3 + $0x20] sm:$0xff]   ;;  %v3849_v56 = vld [vmem:[%s4953_s27 + $0x158] sm:$0xff]   ;;  %v3853_v60 = vld [vmem:[%s4953_s27 + $0x150] sm:$0xff]  }
  0x22   :  { %v3850_v57 = vld [vmem:[%s4955_s3 + $0x58] sm:$0xff]   ;;  %v3854_v61 = vld [vmem:[%s4955_s3 + $0x50] sm:$0xff]   ;;  %v3857_v0 = vld [vmem:[%s4953_s27 + $0x148] sm:$0xff]  }
  0x23   :  { %3290 = vmatpush3.bf16.msra.mxu0 %v3819_v18  ;;  %v3851_v58 = vld [vmem:[%s4953_s27 + $0x118] sm:$0xff]   ;;  %v3855_v62 = vld [vmem:[%s4953_s27 + $0x110] sm:$0xff]   ;;  %v3858_v1 = vld [vmem:[%s4955_s3 + $0x48] sm:$0xff]  }
  0x24   :  { %3312 = vmatpush3.bf16.msra.mxu1 %v3820_v19  ;;  %3291 = vmatprep.subr.bf16.mxu0 %v3821_v20  ;;  %v3852_v59 = vld [vmem:[%s4955_s3 + $0x18] sm:$0xff]   ;;  %v3856_v63 = vld [vmem:[%s4955_s3 + $0x10] sm:$0xff]   ;;  %v3859_v2 = vld [vmem:[%s4953_s27 + $0x108] sm:$0xff]  }
  0x25   :  { %3313 = vmatprep.subr.bf16.mxu1 %v3822_v21  ;;  %v3860_v3 = vld [vmem:[%s4955_s3 + $0x8] sm:$0xff]   ;;  %v3861_v4 = vld [vmem:[%s4953_s27 + $0x140] sm:$0xff]   ;;  %v3865_v16 = vld [vmem:[%s4955_s3 + $0xf8] sm:$0xff]  }
  0x26   :  { %v3862_v5 = vld [vmem:[%s4955_s3 + $0x40] sm:$0xff]   ;;  %v193_v8 = vld [vmem:[%s4954_s25 + $0x28] sm:$0xff]  ;;  %v3866_v17 = vld [vmem:[%s4955_s3 + $0x178] sm:$0xff]  }
  0x27   :  { %3292 = vmatpush3.bf16.msra.mxu0 %v3823_v22  ;;  %v3863_v6 = vld [vmem:[%s4953_s27 + $0x100] sm:$0xff]   ;;  %v81_v9 = vld [vmem:[%s4956_s1 + $0x8] sm:$0xff]  ;;  %v295_v10 = vpack.c.bf16 %v193_v8, %v193_v8  ;;  %v3867_v18 = vld [vmem:[%s4955_s3 + $0xb8] sm:$0xff]   ;;  %s4958_s27 = sld [smem:[#allocation7_spill]] }
  0x28   :  { %3314 = vmatpush3.bf16.msra.mxu1 %v3824_v23  ;;  %3293 = vmatprep.subr.bf16.mxu0 %v3825_v24  ;;  %v3864_v7 = vld [vmem:[%s4955_s3] sm:$0xff]   ;;  %v183_v11 = vpack.c.bf16 %v81_v9, %v81_v9  ;;  %v3868_v19 = vld [vmem:[%s4955_s3 + $0x138] sm:$0xff]   ;;  %v3869_v20 = vld [vmem:[%s4955_s3 + $0xf0] sm:$0xff]  }
  0x29   :  { %3315 = vmatprep.subr.bf16.mxu1 %v3826_v25  ;;  %v192_v12 = vld [vmem:[%s4954_s25 + $0x20] sm:$0xff]  ;;  %v3870_v21 = vld [vmem:[%s4955_s3 + $0x170] sm:$0xff]   ;;  %v3873_v24 = vld [vmem:[%s4955_s3 + $0xe8] sm:$0xff]  }
  0x2a   :  { %v80_v13 = vld [vmem:[%s4956_s1] sm:$0xff]  ;;  %v294_v14 = vpack.c.bf16 %v192_v12, %v192_v12  ;;  %v3871_v22 = vld [vmem:[%s4955_s3 + $0xb0] sm:$0xff]   ;;  %v3874_v25 = vld [vmem:[%s4955_s3 + $0x168] sm:$0xff]  }
  0x2b   :  { %3294 = vmatpush3.bf16.msra.mxu0 %v3827_v26  ;;  %v182_v15 = vpack.c.bf16 %v80_v13, %v80_v13  ;;  %v3872_v23 = vld [vmem:[%s4955_s3 + $0x130] sm:$0xff]   ;;  %v3875_v26 = vld [vmem:[%s4955_s3 + $0xa8] sm:$0xff]   ;;  %v3881_v32 = vld [vmem:[%s4955_s3 + $0xd8] sm:$0xff]  }
  0x2c   :  { %3316 = vmatpush3.bf16.msra.mxu1 %v3828_v27  ;;  %3295 = vmatprep.subr.bf16.mxu0 %v3829_v28  ;;  %v3876_v27 = vld [vmem:[%s4955_s3 + $0x128] sm:$0xff]   ;;  %v3877_v28 = vld [vmem:[%s4955_s3 + $0xe0] sm:$0xff]   ;;  %v3882_v33 = vld [vmem:[%s4955_s3 + $0x158] sm:$0xff]  }
  0x2d   :  { %3317 = vmatprep.subr.bf16.mxu1 %v3830_v29  ;;  %v3878_v29 = vld [vmem:[%s4955_s3 + $0x160] sm:$0xff]   ;;  %v3883_v34 = vld [vmem:[%s4955_s3 + $0x98] sm:$0xff]   ;;  %v3885_v36 = vld [vmem:[%s4955_s3 + $0xd0] sm:$0xff]  }
  0x2e   :  { %v3884_v35 = vld [vmem:[%s4955_s3 + $0x118] sm:$0xff]   ;;  %v3887_v38 = vld [vmem:[%s4955_s3 + $0x90] sm:$0xff]  }
  0x2f   :  { %3296 = vmatpush3.bf16.msra.mxu0 %v3831_v30  ;;  %v3879_v30 = vld [vmem:[%s4955_s3 + $0xa0] sm:$0xff]   ;;  %v3906_v8 = vld [vmem:[%s4923_s12 + $0x38] sm:$0xff]   ;;  %v3908_v9 = vld [vmem:[%s4923_s12 + $0x30] sm:$0xff]  }
  0x30   :  { %3318 = vmatpush3.bf16.msra.mxu1 %v3832_v31  ;;  %3325 = vmatprep.subr.bf16.mxu0 %v3833_v40  ;;  %v3880_v31 = vld [vmem:[%s4955_s3 + $0x120] sm:$0xff]   ;;  %v3889_v40 = vld [vmem:[%s4955_s3 + $0xc8] sm:$0xff]   ;;  %v3914_v12 = vld [vmem:[%s4923_s12 + $0x18] sm:$0xff]  }
  0x31   :  { %3347 = vmatprep.subr.bf16.mxu1 %v3834_v41  ;;  %v3890_v41 = vld [vmem:[%s4955_s3 + $0x148] sm:$0xff]   ;;  %v3916_v13 = vld [vmem:[%s4923_s12 + $0x10] sm:$0xff]  }
  0x32   :  { %617 = vmatmul.mubr.bf16.vlgmr.msra.gmra.mxu0 %v290_v37  ;;  %v3886_v37 = vld [vmem:[%s4955_s3 + $0x150] sm:$0xff]  }
  0x33   :  { %657 = vmatmul.mubr.bf16.vlgmr.msra.gmra.mxu1 %v292_v39  ;;  %3326 = vmatpush3.bf16.msra.mxu0 %v3835_v42  ;;  %v3888_v39 = vld [vmem:[%s4955_s3 + $0x110] sm:$0xff]   ;;  %v3891_v42 = vld [vmem:[%s4955_s3 + $0x88] sm:$0xff]  }
  0x34   :  { %3348 = vmatpush3.bf16.msra.mxu1 %v3836_v43  ;;  %3327 = vmatprep.subr.bf16.mxu0 %v3837_v44  ;;  %v3892_v43 = vld [vmem:[%s4955_s3 + $0x108] sm:$0xff]   ;;  %v3893_v44 = vld [vmem:[%s4955_s3 + $0xc0] sm:$0xff]  }
  0x35   :  { %3349 = vmatprep.subr.bf16.mxu1 %v3838_v45  ;;  %696 = vmatprep.mubr.bf16.mxu0 %v295_v10  ;;  %v3894_v45 = vld [vmem:[%s4955_s3 + $0x140] sm:$0xff]   ;;  %v3910_v10 = vld [vmem:[%s4923_s12 + $0x28] sm:$0xff]  }
  0x36   :  { %1024 = vmatprep.mubr.bf16.mxu1 %v183_v11  ;;  %v3912_v11 = vld [vmem:[%s4923_s12 + $0x20] sm:$0xff]  }
  0x37   :  { %3328 = vmatpush3.bf16.msra.mxu0 %v3839_v46  ;;  %v3895_v46 = vld [vmem:[%s4955_s3 + $0x80] sm:$0xff]  }
  0x38   :  { %3350 = vmatpush3.bf16.msra.mxu1 %v3840_v47  ;;  %3329 = vmatprep.subr.bf16.mxu0 %v3841_v48  ;;  %v3896_v47 = vld [vmem:[%s4955_s3 + $0x100] sm:$0xff]   ;;  %v83_v48 = vld [vmem:[%s4956_s1 + $0x18] sm:$0xff] }
  0x39   :  { %3351 = vmatprep.subr.bf16.mxu1 %v3842_v49  ;;  %v185_v49 = vpack.c.bf16 %v83_v48, %v83_v48 }
  0x3b   :  { %3330 = vmatpush3.bf16.msra.mxu0 %v3843_v50  ;;  %v85_v50 = vld [vmem:[%s4956_s1 + $0x28] sm:$0xff] }
  0x3c   :  { %3352 = vmatpush3.bf16.msra.mxu1 %v3844_v51  ;;  %3331 = vmatprep.subr.bf16.mxu0 %v3845_v52  ;;  %v82_v51 = vld [vmem:[%s4956_s1 + $0x10] sm:$0xff]  ;;  %v84_v52 = vld [vmem:[%s4956_s1 + $0x20] sm:$0xff] }
  0x3d   :  { %3353 = vmatprep.subr.bf16.mxu1 %v3846_v53  ;;  %v187_v53 = vpack.c.bf16 %v85_v50, %v85_v50 }
  0x3f   :  { %3332 = vmatpush3.bf16.msra.mxu0 %v3847_v54  ;;  %v184_v54 = vpack.c.bf16 %v82_v51, %v82_v51 }
  0x40   :  { %3354 = vmatpush3.bf16.msra.mxu1 %v3848_v55  ;;  %3333 = vmatprep.subr.bf16.mxu0 %v3849_v56  ;;  %v186_v55 = vpack.c.bf16 %v84_v52, %v84_v52  ;;  %v3982_v56 = vmov 0.0   ;;  %v3191_v52 = vld [vmem:[%s4924_s9] ss:$0 sm:$0xff] }
  0x41   :  { %3355 = vmatprep.subr.bf16.mxu1 %v3850_v57  ;;  %v1113_v57 = vld [vmem:[%s4957_s7] sm:$0xf] }
  0x43   :  { %3334 = vmatpush3.bf16.msra.mxu0 %v3851_v58  ;;  %v1121_v58 = vsel %vm1119_vm0, %v1113_v57, 0 }
  0x44   :  { %3356 = vmatpush3.bf16.msra.mxu1 %v3852_v59  ;;  %3335 = vmatprep.subr.bf16.mxu0 %v3853_v60  ;;  %v3897_v59 = vld [vmem:[%s4958_s27] sm:$0xff]  }
  0x45   :  { %3357 = vmatprep.subr.bf16.mxu1 %v3854_v61  ;;  %v1112_v60 = vld [vmem:[%s4959_s2] sm:$0xff] }
  0x46   :  { %v1164_v61 = vld [vmem:[%s4960_s0] sm:$0xff] }
  0x47   :  { %3336 = vmatpush3.bf16.msra.mxu0 %v3855_v62  ;;  %v1114_v62 = vpack.c.bf16 %v1112_v60, %v1112_v60 }
  0x48   :  { %3358 = vmatpush3.bf16.msra.mxu1 %v3856_v63  ;;  %3337 = vmatprep.subr.bf16.mxu0 %v3857_v0  ;;  %v1167_v63 = vpack.c.bf16 %v1164_v61, %v1164_v61  ;;  %v3898_v0 = vld [vmem:[%s4961_s6 + $0x38] sm:$0xff]  }
  0x49   :  { %3359 = vmatprep.subr.bf16.mxu1 %v3858_v1  ;;  %v3899_v1 = vld [vmem:[%s4961_s6 + $0x30] sm:$0xff]  }
  0x4b   :  { %3338 = vmatpush3.bf16.msra.mxu0 %v3859_v2  ;;  %v3900_v2 = vld [vmem:[%s4961_s6 + $0x28] sm:$0xff]  }
  0x4c   :  { %3360 = vmatpush3.bf16.msra.mxu1 %v3860_v3  ;;  %3339 = vmatprep.subr.bf16.mxu0 %v3861_v4  ;;  %v3901_v3 = vld [vmem:[%s4961_s6 + $0x20] sm:$0xff]   ;;  %v3902_v4 = vld [vmem:[%s4961_s6 + $0x18] sm:$0xff]  }
  0x4d   :  { %3361 = vmatprep.subr.bf16.mxu1 %v3862_v5  ;;  %v3903_v5 = vld [vmem:[%s4961_s6 + $0x10] sm:$0xff]  }
  0x4f   :  { %3340 = vmatpush3.bf16.msra.mxu0 %v3863_v6  ;;  %v3904_v6 = vld [vmem:[%s4961_s6 + $0x8] sm:$0xff]  }
  0x50   :  { %3362 = vmatpush3.bf16.msra.mxu1 %v3864_v7  ;;  %3369 = vmatprep.subr.bf16.mxu0 %v3865_v16  ;;  %v3905_v7 = vld [vmem:[%s4961_s6] sm:$0xff]  }
  0x51   :  { %3391 = vmatprep.subr.bf16.mxu1 %v3866_v17 }
  0x52   :  { %697 = vmatmul.mubr.bf16.vlgmr.msra.gmra.mxu0 %v294_v14 }
  0x53   :  { %1025 = vmatmul.mubr.bf16.vlgmr.msra.gmra.mxu1 %v182_v15  ;;  %3370 = vmatpush3.bf16.msra.mxu0 %v3867_v18 }
  0x54   :  { %3392 = vmatpush3.bf16.msra.mxu1 %v3868_v19  ;;  %3371 = vmatprep.subr.bf16.mxu0 %v3869_v20 }
  0x55   :  { %3393 = vmatprep.subr.bf16.mxu1 %v3870_v21  ;;  %1064 = vmatprep.mubr.bf16.mxu0 %v185_v49 }
  0x56   :  { %1104 = vmatprep.mubr.bf16.mxu1 %v187_v53 }
  0x57   :  { %3372 = vmatpush3.bf16.msra.mxu0 %v3871_v22 }
  0x58   :  { %3394 = vmatpush3.bf16.msra.mxu1 %v3872_v23  ;;  %3373 = vmatprep.subr.bf16.mxu0 %v3873_v24 }
  0x59   :  { %3395 = vmatprep.subr.bf16.mxu1 %v3874_v25 }
  0x5b   :  { %3374 = vmatpush3.bf16.msra.mxu0 %v3875_v26 }
  0x5c   :  { %3396 = vmatpush3.bf16.msra.mxu1 %v3876_v27  ;;  %3375 = vmatprep.subr.bf16.mxu0 %v3877_v28 }
  0x5d   :  { %3397 = vmatprep.subr.bf16.mxu1 %v3878_v29 }
  0x5f   :  { %3376 = vmatpush3.bf16.msra.mxu0 %v3879_v30 }
  0x60   :  { %3398 = vmatpush3.bf16.msra.mxu1 %v3880_v31  ;;  %3377 = vmatprep.subr.bf16.mxu0 %v3881_v32 }
  0x61   :  { %3399 = vmatprep.subr.bf16.mxu1 %v3882_v33 }
  0x63   :  { %3378 = vmatpush3.bf16.msra.mxu0 %v3883_v34 }
  0x64   :  { %3400 = vmatpush3.bf16.msra.mxu1 %v3884_v35  ;;  %3379 = vmatprep.subr.bf16.mxu0 %v3885_v36 }
  0x65   :  { %3401 = vmatprep.subr.bf16.mxu1 %v3886_v37 }
  0x67   :  { %3380 = vmatpush3.bf16.msra.mxu0 %v3887_v38 }
  0x68   :  { %3402 = vmatpush3.bf16.msra.mxu1 %v3888_v39  ;;  %3381 = vmatprep.subr.bf16.mxu0 %v3889_v40 }
  0x69   :  { %3403 = vmatprep.subr.bf16.mxu1 %v3890_v41 }
  0x6b   :  { %3382 = vmatpush3.bf16.msra.mxu0 %v3891_v42 }
  0x6c   :  { %3404 = vmatpush3.bf16.msra.mxu1 %v3892_v43  ;;  %3383 = vmatprep.subr.bf16.mxu0 %v3893_v44 }
  0x6d   :  { %3405 = vmatprep.subr.bf16.mxu1 %v3894_v45 }
  0x6f   :  { %3384 = vmatpush3.bf16.msra.mxu0 %v3895_v46 }
  0x70   :  { %3406 = vmatpush3.bf16.msra.mxu1 %v3896_v47  ;;  %3522 = vmatprep.subr.bf16.mxu0 %v3982_v56 }
  0x71   :  { %3528 = vmatprep.subr.bf16.mxu1 %v3982_v56 }
  0x72   :  { %1065 = vmatmul.mubr.bf16.vlgmr.msra.gmra.mxu0 %v184_v54 }
  0x73   :  { %1105 = vmatmul.mubr.bf16.vlgmr.msra.gmra.mxu1 %v186_v55  ;;  %3523 = vmatpush3.bf16.msra.mxu0 %v1121_v58 }
  0x74   :  { %3529 = vmatpush3.bf16.msra.mxu1 %v3897_v59  ;;  %3524 = vmatprep.mubr.msk.bf16.mxu0 %vm3983_vm1, %v3982_v56 }
  0x75   :  { %3530 = vmatprep.mubr.msk.bf16.mxu1 %vm3983_vm1, %v3982_v56  ;;  %3534 = vmatprep.subr.bf16.mxu0 %v3982_v56 }
  0x76   :  { %3554 = vmatprep.subr.bf16.mxu1 %v3982_v56 }
  0x7a   :  { %3525 = vmatmul.mubr.msk.bf16.vlgmr.msra.gmra.mxu0 %vm1115_vm2, %v1114_v62 }
  0x7b   :  { %3531 = vmatmul.mubr.msk.bf16.vlgmr.msra.gmra.mxu1 %vm1174_vm3, %v1167_v63  ;;  %3550 = vmatprep.mubr.msk.bf16.mxu0 %vm3983_vm1, %v3982_v56 }
  0x7c   :  { %3570 = vmatprep.mubr.msk.bf16.mxu1 %vm3983_vm1, %v3982_v56  ;;  %3535 = vmatpush3.bf16.msra.mxu0 %v3898_v0  ;;  %v3907_v0 = vld [vmem:[%s4923_s12 + $0x78] sm:$0xff]  }
  0x7d   :  { %3536 = vmatprep.subr.bf16.mxu0 %v3982_v56  ;;  %3555 = vmatpush3.bf16.msra.mxu1 %v3906_v8  ;;  %v3919_v8 = vld [vmem:[%s4923_s12 + $0x48] sm:$0xff]  }
  0x7e   :  { %3556 = vmatprep.subr.bf16.mxu1 %v3982_v56 }
  0x80   :  { %3537 = vmatpush3.bf16.msra.mxu0 %v3899_v1 }
  0x81   :  { %3538 = vmatprep.subr.bf16.mxu0 %v3982_v56  ;;  %3557 = vmatpush3.bf16.msra.mxu1 %v3908_v9  ;;  %v3920_v9 = vld [vmem:[%s4923_s12] sm:$0xff]  }
  0x82   :  { %3558 = vmatprep.subr.bf16.mxu1 %v3982_v56 }
  0x84   :  { %3539 = vmatpush3.bf16.msra.mxu0 %v3900_v2  ;;  %v3909_v2 = vld [vmem:[%s4923_s12 + $0x70] sm:$0xff]  }
  0x85   :  { %3540 = vmatprep.subr.bf16.mxu0 %v3982_v56  ;;  %3559 = vmatpush3.bf16.msra.mxu1 %v3910_v10  ;;  %v3921_v10 = vld [vmem:[%s4923_s12 + $0x40] sm:$0xff]  }
  0x86   :  { %3560 = vmatprep.subr.bf16.mxu1 %v3982_v56 }
  0x88   :  { %3541 = vmatpush3.bf16.msra.mxu0 %v3901_v3  ;;  %v3911_v3 = vld [vmem:[%s4923_s12 + $0x68] sm:$0xff]  }
  0x89   :  { %3542 = vmatprep.subr.bf16.mxu0 %v3982_v56  ;;  %3561 = vmatpush3.bf16.msra.mxu1 %v3912_v11  ;;  %v3192_v11 = vld [vmem:[%s4925_s11] ss:$0 sm:$0xff] }
  0x8a   :  { %3562 = vmatprep.subr.bf16.mxu1 %v3982_v56 }
  0x8c   :  { %3543 = vmatpush3.bf16.msra.mxu0 %v3902_v4  ;;  %v3913_v4 = vld [vmem:[%s4923_s12 + $0x60] sm:$0xff]  }
  0x8d   :  { %3544 = vmatprep.subr.bf16.mxu0 %v3982_v56  ;;  %3563 = vmatpush3.bf16.msra.mxu1 %v3914_v12 }
  0x8e   :  { %3564 = vmatprep.subr.bf16.mxu1 %v3982_v56 }
  0x90   :  { %3545 = vmatpush3.bf16.msra.mxu0 %v3903_v5  ;;  %v3915_v5 = vld [vmem:[%s4923_s12 + $0x58] sm:$0xff]  }
  0x91   :  { %3546 = vmatprep.subr.bf16.mxu0 %v3982_v56  ;;  %3565 = vmatpush3.bf16.msra.mxu1 %v3916_v13 }
  0x92   :  { %3566 = vmatprep.subr.bf16.mxu1 %v3982_v56 }
  0x94   :  { %3547 = vmatpush3.bf16.msra.mxu0 %v3904_v6  ;;  %v3917_v6 = vld [vmem:[%s4923_s12 + $0x50] sm:$0xff]  }
  0x95   :  { %3548 = vmatprep.subr.bf16.mxu0 %v3982_v56 }
  0x98   :  { %3549 = vmatpush3.bf16.msra.mxu0 %v3905_v7  ;;  %v3918_v7 = vld [vmem:[%s4923_s12 + $0x8] sm:$0xff]  }
  0x99   :  { %3574 = vmatprep.subr.bf16.mxu0 %v3982_v56  ;;  %3567 = vmatpush3.bf16.msra.mxu1 %v3918_v7 }
  0x9a   :  { %3568 = vmatprep.subr.bf16.mxu1 %v3982_v56 }
  0x9d   :  { %3569 = vmatpush3.bf16.msra.mxu1 %v3920_v9 }
  0x9e   :  { %3594 = vmatprep.subr.bf16.mxu1 %v3982_v56 }
  0xf2   :  { %v3297_v14 = vpop.f32.mrf.mxu0 }
  0xf3   :  { %v3319_v15 = vpop.f32.mrf.mxu1 }
  0xf4   :  { %v3298_v16 = vpop.f32.mrf.mxu0 }
  0xf5   :  { %v3320_v17 = vpop.f32.mrf.mxu1  ;;  %v3299_v30 = vadd.f32 %v3298_v16, %v3297_v14 }
  0xf6   :  { %v3300_v18 = vpop.f32.mrf.mxu0  ;;  %v3321_v31 = vadd.f32 %v3320_v17, %v3319_v15 }
  0xf7   :  { %v3322_v19 = vpop.f32.mrf.mxu1  ;;  %v3922_v18 = vld [vmem:[%s4923_s12 + $0xb8] sm:$0xff]  }
  0xf8   :  { %v3301_v20 = vpop.f32.mrf.mxu0  ;;  %v659_v33 = vadd.f32 %v3321_v31, %v3299_v30  ;;  %v3923_v19 = vld [vmem:[%s4923_s12 + $0xf8] sm:$0xff]   ;;  %v3932_v30 = vld [vmem:[%s4923_s12 + $0x90] sm:$0xff]  }
  0xf9   :  { %v3323_v21 = vpop.f32.mrf.mxu1  ;;  %v3933_v31 = vld [vmem:[%s4923_s12 + $0xd0] sm:$0xff]  }
 0x112   :  { %v3341_v22 = vpop.f32.mrf.mxu0 }
 0x113   :  { %v3363_v23 = vpop.f32.mrf.mxu1 }
 0x114   :  { %v3342_v24 = vpop.f32.mrf.mxu0 }
 0x115   :  { %v3364_v25 = vpop.f32.mrf.mxu1  ;;  %v3343_v32 = vadd.f32 %v3342_v24, %v3341_v22  ;;  %v3924_v22 = vld [vmem:[%s4923_s12 + $0xb0] sm:$0xff]   ;;  %v3926_v24 = vld [vmem:[%s4923_s12 + $0xa8] sm:$0xff]  }
 0x116   :  { %v3344_v26 = vpop.f32.mrf.mxu0  ;;  %v3365_v35 = vadd.f32 %v3364_v25, %v3363_v23  ;;  %v3925_v23 = vld [vmem:[%s4923_s12 + $0xf0] sm:$0xff]   ;;  %v3927_v25 = vld [vmem:[%s4923_s12 + $0xe8] sm:$0xff]  }
 0x117   :  { %v3366_v27 = vpop.f32.mrf.mxu1  ;;  %v699_v34 = vadd.f32 %v3343_v32, %v659_v33  ;;  %v3928_v26 = vld [vmem:[%s4923_s12 + $0xa0] sm:$0xff]   ;;  %v3934_v32 = vld [vmem:[%s4923_s12 + $0x88] sm:$0xff]  }
 0x118   :  { %v3345_v28 = vpop.f32.mrf.mxu0  ;;  %v3929_v27 = vld [vmem:[%s4923_s12 + $0xe0] sm:$0xff]   ;;  %v3935_v33 = vld [vmem:[%s4923_s12 + $0xc8] sm:$0xff]  }
 0x119   :  { %v3367_v29 = vpop.f32.mrf.mxu1  ;;  %v1027_v39 = vadd.f32 %v3365_v35, %v699_v34  ;;  %v3930_v28 = vld [vmem:[%s4923_s12 + $0x98] sm:$0xff]   ;;  %v3936_v34 = vld [vmem:[%s4923_s12 + $0x80] sm:$0xff]  }
 0x11a   :  { %v3931_v29 = vld [vmem:[%s4923_s12 + $0xd8] sm:$0xff]   ;;  %v3937_v35 = vld [vmem:[%s4923_s12 + $0xc0] sm:$0xff]  }
 0x132   :  { %v3385_v36 = vpop.f32.mrf.mxu0 }
 0x133   :  { %v3407_v37 = vpop.f32.mrf.mxu1 }
 0x134   :  { %v3386_v38 = vpop.f32.mrf.mxu0 }
 0x135   :  { %v3387_v40 = vadd.f32 %v3386_v38, %v3385_v36  ;;  %v3408_v41 = vpop.f32.mrf.mxu1  ;;  %v1772_v36 = vld [vmem:[%s4926_s14] sm:$0x1]  ;;  %v3984_v38 = vmov 0  }
 0x136   :  { %v3388_v42 = vpop.f32.mrf.mxu0  ;;  %v3409_v44 = vadd.f32 %v3408_v41, %v3407_v37  ;;  %v1781_v37 = vsel %vm1776_vm6, %v1772_v36, 0  ;;  %3799 = vset.pattern.permute.xlu0 %v3984_v38  ;;  %3800 = vset.pattern.permute.xlu1 %v3984_v38 }
 0x137   :  { %v1067_v43 = vadd.f32 %v3387_v40, %v1027_v39  ;;  %v3410_v45 = vpop.f32.mrf.mxu1  ;;  %v1773_v39 = vld [vmem:[%s4926_s14 + $0x1] sm:$0x1] }
 0x138   :  { %v3389_v46 = vpop.f32.mrf.mxu0 }
 0x139   :  { %v3411_v47 = vpop.f32.mrf.mxu1  ;;  %v1107_v48 = vadd.f32 %v3409_v44, %v1067_v43  ;;  %v1827_v43 = vsel %vm1776_vm6, %v1773_v39, 0 }
 0x13a   :  { %v1157_v49 = vpop.f32.mrf.mxu0 }
 0x13b   :  { %v1163_v50 = vadd.f32 %v1157_v49, %v1107_v48  ;;  %v1212_v51 = vpop.f32.mrf.mxu1 }
 0x13c   :  { %v3526_v53 = vpop.f32.mrf.mxu0 }
 0x13d   :  { %v1218_v54 = vadd.f32 %v1212_v51, %v1163_v50  ;;  %v3532_v55 = vpop.f32.mrf.mxu1  ;;  %v1774_v51 = vld [vmem:[%s4926_s14 + $0x2] sm:$0x1] }
 0x13e   :  { %v1160_v57 = vpop.f32.mrf.mxu0  ;;  %v1775_v55 = vld [vmem:[%s4926_s14 + $0x3] sm:$0x1] }
 0x13f   :  { %v1226_v58 = vadd.f32 %v3191_v52, %v1218_v54  ;;  %v1215_v59 = vpop.f32.mrf.mxu1  ;;  %v1768_v52 = vld [vmem:[%s4927_s13] sm:$0x1]  ;;  %v1873_v54 = vsel %vm1776_vm6, %v1774_v51, 0 }
 0x140   :  { %v3527_v60 = vpop.f32.mrf.mxu0 }
 0x141   :  { %vm1227_vm4 = vcmp.gt.f32.partialorder %v1226_v58, 0.0  ;;  %v1228_v61 = vmul.f32 0.01, %v1226_v58  ;;  %v3533_v62 = vpop.f32.mrf.mxu1  ;;  %v1919_v60 = vsel %vm1776_vm6, %v1775_v55, 0 }
 0x143   :  { %v1229_v63 = vsel %vm1227_vm4, %v1226_v58, %v1228_v61 }
 0x144   :  { %v1246_v1 = vpack.c.bf16 %v1229_v63, %v1229_v63 }
 0x146   :  { %3551 = vmatmul.mubr.bf16.vlgmr.msra.gmra.mxu0 %v1246_v1 }
 0x147   :  { %3575 = vmatpush3.bf16.msra.mxu0 %v3907_v0  ;;  %3590 = vmatprep.mubr.msk.bf16.mxu0 %vm3983_vm1, %v3982_v56 }
 0x148   :  { %3576 = vmatprep.subr.bf16.mxu0 %v3982_v56 }
 0x14b   :  { %3577 = vmatpush3.bf16.msra.mxu0 %v3909_v2 }
 0x14c   :  { %3578 = vmatprep.subr.bf16.mxu0 %v3982_v56 }
 0x14f   :  { %3579 = vmatpush3.bf16.msra.mxu0 %v3911_v3 }
 0x150   :  { %3580 = vmatprep.subr.bf16.mxu0 %v3982_v56 }
 0x153   :  { %3581 = vmatpush3.bf16.msra.mxu0 %v3913_v4  ;;  %v1770_v4 = vld [vmem:[%s4927_s13 + $0x2] sm:$0x1] }
 0x154   :  { %3582 = vmatprep.subr.bf16.mxu0 %v3982_v56 }
 0x157   :  { %3583 = vmatpush3.bf16.msra.mxu0 %v3915_v5 }
 0x158   :  { %3584 = vmatprep.subr.bf16.mxu0 %v3982_v56 }
 0x15b   :  { %3585 = vmatpush3.bf16.msra.mxu0 %v3917_v6 }
 0x15c   :  { %3586 = vmatprep.subr.bf16.mxu0 %v3982_v56 }
 0x15f   :  { %3587 = vmatpush3.bf16.msra.mxu0 %v3919_v8  ;;  %v1769_v8 = vld [vmem:[%s4927_s13 + $0x1] sm:$0x1] }
 0x160   :  { %3588 = vmatprep.subr.bf16.mxu0 %v3982_v56 }
 0x163   :  { %3589 = vmatpush3.bf16.msra.mxu0 %v3921_v10  ;;  %v1771_v10 = vld [vmem:[%s4927_s13 + $0x3] sm:$0x1] }
 0x164   :  { %3614 = vmatprep.subr.bf16.mxu0 %v3982_v56 }
 0x206   :  { %v1336_v12 = vpop.f32.mrf.mxu0 }
 0x207   :  { %v1337_v13 = vadd.f32 %v3192_v11, %v1336_v12 }
 0x208   :  { %v3552_v14 = vpop.f32.mrf.mxu0 }
 0x209   :  { %vm1342_vm5 = vcmp.gt.f32.partialorder %v1337_v13, 0.0  ;;  %v1343_v15 = vmul.f32 0.01, %v1337_v13 }
 0x20a   :  { %v1339_v16 = vpop.f32.mrf.mxu0 }
 0x20b   :  { %v1344_v17 = vsel %vm1342_vm5, %v1337_v13, %v1343_v15 }
 0x20c   :  { %v1347_v20 = vpack.c.bf16 %v1344_v17, %v1344_v17  ;;  %v3553_v21 = vpop.f32.mrf.mxu0 }
 0x20e   :  { %3571 = vmatmul.mubr.bf16.vlgmr.msra.gmra.mxu1 %v1347_v20  ;;  %3591 = vmatmul.mubr.bf16.vlgmr.msra.gmra.mxu0 %v1347_v20 }
 0x20f   :  { %3595 = vmatpush3.bf16.msra.mxu1 %v3922_v18  ;;  %3615 = vmatpush3.bf16.msra.mxu0 %v3923_v19 }
 0x210   :  { %3596 = vmatprep.subr.bf16.mxu1 %v3982_v56  ;;  %3616 = vmatprep.subr.bf16.mxu0 %v3982_v56 }
 0x211   :  { %3610 = vmatprep.mubr.msk.bf16.mxu1 %vm3983_vm1, %v3982_v56  ;;  %3630 = vmatprep.mubr.msk.bf16.mxu0 %vm3983_vm1, %v3982_v56 }
 0x213   :  { %3597 = vmatpush3.bf16.msra.mxu1 %v3924_v22  ;;  %3617 = vmatpush3.bf16.msra.mxu0 %v3925_v23 }
 0x214   :  { %3598 = vmatprep.subr.bf16.mxu1 %v3982_v56  ;;  %3618 = vmatprep.subr.bf16.mxu0 %v3982_v56 }
 0x217   :  { %3599 = vmatpush3.bf16.msra.mxu1 %v3926_v24  ;;  %3619 = vmatpush3.bf16.msra.mxu0 %v3927_v25 }
 0x218   :  { %3600 = vmatprep.subr.bf16.mxu1 %v3982_v56  ;;  %3620 = vmatprep.subr.bf16.mxu0 %v3982_v56 }
 0x21b   :  { %3601 = vmatpush3.bf16.msra.mxu1 %v3928_v26  ;;  %3621 = vmatpush3.bf16.msra.mxu0 %v3929_v27 }
 0x21c   :  { %3602 = vmatprep.subr.bf16.mxu1 %v3982_v56  ;;  %3622 = vmatprep.subr.bf16.mxu0 %v3982_v56 }
 0x21f   :  { %3603 = vmatpush3.bf16.msra.mxu1 %v3930_v28  ;;  %3623 = vmatpush3.bf16.msra.mxu0 %v3931_v29 }
 0x220   :  { %3604 = vmatprep.subr.bf16.mxu1 %v3982_v56  ;;  %3624 = vmatprep.subr.bf16.mxu0 %v3982_v56 }
 0x223   :  { %3605 = vmatpush3.bf16.msra.mxu1 %v3932_v30  ;;  %3625 = vmatpush3.bf16.msra.mxu0 %v3933_v31 }
 0x224   :  { %3606 = vmatprep.subr.bf16.mxu1 %v3982_v56  ;;  %3626 = vmatprep.subr.bf16.mxu0 %v3982_v56 }
 0x227   :  { %3607 = vmatpush3.bf16.msra.mxu1 %v3934_v32  ;;  %3627 = vmatpush3.bf16.msra.mxu0 %v3935_v33 }
 0x228   :  { %3608 = vmatprep.subr.bf16.mxu1 %v3982_v56  ;;  %3628 = vmatprep.subr.bf16.mxu0 %v3982_v56 }
 0x22b   :  { %3609 = vmatpush3.bf16.msra.mxu1 %v3936_v34  ;;  %3629 = vmatpush3.bf16.msra.mxu0 %v3937_v35 }
 0x22c   :  { %3634 = vmatprep.subr.bf16.mxu1 %v3982_v56  ;;  %3658 = vmatprep.subr.bf16.mxu0 %v3982_v56 }
 0x22e   :  { %3611 = vmatmul.mubr.bf16.vlgmr.msra.gmra.mxu1 %v1347_v20  ;;  %3631 = vmatmul.mubr.bf16.vlgmr.msra.gmra.mxu0 %v1347_v20 }
 0x22f   :  { %3635 = vmatpush3.bf16.xpose.msra.mxu1 %v1781_v37  ;;  %3636 = vmatprep.mubr.msk.bf16.mxu1 %vm3983_vm1, %v3982_v56 }
 0x230   :  { %3640 = vmatprep.subr.bf16.mxu1 %v3982_v56  ;;  %3660 = vmatprep.mubr.msk.bf16.mxu0 %vm3983_vm1, %v3982_v56 }
 0x2ce   :  { %v1494_v40 = vpop.f32.mrf.mxu1  ;;  %v1582_v41 = vpop.f32.mrf.mxu0 }
 0x2cf   :  { %v1764_v42 = vpack.c.bf16 %v1494_v40, %v1494_v40  ;;  %v1765_v53 = vpack.c.bf16 %v1582_v41, %v1582_v41 }
 0x2d0   :  { %v3572_v44 = vpop.f32.mrf.mxu1  ;;  %v3592_v45 = vpop.f32.mrf.mxu0 }
 0x2d1   :  { %3637 = vmatmul.mubr.msk.bf16.vlgmr.msra.gmra.mxu1 %vm1776_vm6, %v1764_v42  ;;  %v1778_v46 = vsel %vm1776_vm6, %v1764_v42, 0  ;;  %v1824_v6 = vsel %vm1776_vm6, %v1765_v53, 0  ;;  %v2237_v7 = vsel %vm1119_vm0, %v1764_v42, 0  ;;  %v2282_v11 = vsel %vm1119_vm0, %v1765_v53, 0 }
 0x2d2   :  { %v1497_v47 = vpop.f32.mrf.mxu1  ;;  %v1585_v48 = vpop.f32.mrf.mxu0  ;;  %3641 = vmatpush3.bf16.xpose.msra.mxu1 %v1827_v43  ;;  %3659 = vmatpush3.bf16.xpose.msra.mxu0 %v1778_v46  ;;  %v2153_v45 = vlaneseq }
 0x2d3   :  { %3642 = vmatprep.mubr.msk.bf16.mxu1 %vm3983_vm1, %v3982_v56  ;;  %3646 = vmatprep.subr.bf16.mxu1 %v3982_v56  ;;  %v1345_v47 = vld [vmem:[%s4928_s4] sm:$0xf] }
 0x2d4   :  { %v3573_v49 = vpop.f32.mrf.mxu1  ;;  %v3593_v50 = vpop.f32.mrf.mxu0  ;;  %3670 = vmatprep.subr.bf16.mxu0 %v3982_v56  ;;  %v2154_v46 = vshrl.u32 %v2153_v45, 7  ;;  %vm1346_vm7 = vcmp.gt.bf16.partialorder %v1345_v47, 0  ;;  %v3940_v45 = vld [vmem:[%s4929_s16 + $0x18] sm:$0xff]  }
 0x2d5   :  { %v2185_v49 = vsel %vm1346_vm7, 65537, %v3984_v38 }
 0x2d6   :  { %v4717_v48 = vsub.s32 0, %v2154_v46  ;;  %v2186_v51 = vunpack.c.l.b16 %v2185_v49  ;;  %v3941_v46 = vld [vmem:[%s4929_s16 + $0x10] sm:$0xff]  }
 0x2d8   :  { %vm4721_vm8 = vcmp.ne.s32.totalorder %v2186_v51, 0 }
 0x2d9   :  { %3643 = vmatmul.mubr.msk.bf16.vlgmr.msra.gmra.mxu1 %vm1776_vm6, %v1765_v53  ;;  %3661 = vmatmul.mubr.msk.bf16.vlgmr.msra.gmra.mxu0 %vm1776_vm6, %v1768_v52 }
 0x2da   :  { %3647 = vmatpush3.bf16.xpose.msra.mxu1 %v1873_v54  ;;  %3648 = vmatprep.mubr.msk.bf16.mxu1 %vm3983_vm1, %v3982_v56  ;;  %v3947_v54 = vld [vmem:[%s4933_s20 + $0x30] sm:$0xff]  }
 0x2db   :  { %3652 = vmatprep.subr.bf16.mxu1 %v3982_v56  ;;  %3672 = vmatprep.mubr.msk.bf16.mxu0 %vm3983_vm1, %v3982_v56 }
 0x2ee   :  { %v1670_v57 = vpop.f32.mrf.mxu1  ;;  %v1758_v58 = vpop.f32.mrf.mxu0 }
 0x2ef   :  { %v4670_v59 = vpack.c.bf16 %v1670_v57, %v1670_v57  ;;  %v4684_v5 = vpack.c.bf16 %v1758_v58, %v1758_v58 }
 0x2f0   :  { %v3612_v61 = vpop.f32.mrf.mxu1  ;;  %v3632_v62 = vpop.f32.mrf.mxu0 }
 0x2f1   :  { %3649 = vmatmul.mubr.msk.bf16.vlgmr.msra.gmra.mxu1 %vm1776_vm6, %v4670_v59  ;;  %v1870_v63 = vsel %vm1776_vm6, %v4670_v59, 0  ;;  %v1916_v9 = vsel %vm1776_vm6, %v4684_v5, 0 }
 0x2f2   :  { %3653 = vmatpush3.bf16.xpose.msra.mxu1 %v1919_v60  ;;  %v1673_v0 = vpop.f32.mrf.mxu1  ;;  %v1761_v1 = vpop.f32.mrf.mxu0  ;;  %3671 = vmatpush3.bf16.xpose.msra.mxu0 %v1870_v63 }
 0x2f3   :  { %3654 = vmatprep.mubr.msk.bf16.mxu1 %vm3983_vm1, %v3982_v56  ;;  %3664 = vmatprep.subr.bf16.mxu1 %v3982_v56 }
 0x2f4   :  { %v3613_v2 = vpop.f32.mrf.mxu1  ;;  %v3633_v3 = vpop.f32.mrf.mxu0  ;;  %3682 = vmatprep.subr.bf16.mxu0 %v3982_v56 }
 0x2f9   :  { %3655 = vmatmul.mubr.msk.bf16.vlgmr.msra.gmra.mxu1 %vm1776_vm6, %v4684_v5  ;;  %3673 = vmatmul.mubr.msk.bf16.vlgmr.msra.gmra.mxu0 %vm1776_vm6, %v1770_v4 }
 0x2fa   :  { %3665 = vmatpush3.bf16.xpose.msra.mxu1 %v1824_v6  ;;  %3683 = vmatpush3.bf16.msra.mxu0 %v2237_v7 }
 0x2fb   :  { %3666 = vmatprep.mubr.msk.bf16.mxu1 %vm3983_vm1, %v3982_v56  ;;  %3676 = vmatprep.subr.bf16.mxu1 %v3982_v56 }
 0x2fc   :  { %3684 = vmatprep.mubr.msk.bf16.mxu0 %vm3983_vm1, %v3982_v56  ;;  %3694 = vmatprep.subr.bf16.mxu0 %v3982_v56 }
 0x301   :  { %3667 = vmatmul.mubr.msk.bf16.vlgmr.msra.gmra.mxu1 %vm1776_vm6, %v1769_v8 }
 0x302   :  { %3677 = vmatpush3.bf16.xpose.msra.mxu1 %v1916_v9  ;;  %3678 = vmatprep.mubr.msk.bf16.mxu1 %vm3983_vm1, %v3982_v56 }
 0x303   :  { %3688 = vmatprep.subr.bf16.mxu1 %v3982_v56 }
 0x309   :  { %3679 = vmatmul.mubr.msk.bf16.vlgmr.msra.gmra.mxu1 %vm1776_vm6, %v1771_v10 }
 0x30a   :  { %3689 = vmatpush3.bf16.msra.mxu1 %v2282_v11  ;;  %3690 = vmatprep.mubr.msk.bf16.mxu1 %vm3983_vm1, %v3982_v56 }
 0x30b   :  { %3700 = vmatprep.subr.bf16.mxu1 %v3982_v56 }
 0x391   :  { %v1817_v12 = vpop.f32.mrf.mxu1 }
 0x392   :  { %2135 = vperm.xlu0 %3799, %v1817_v12  }
 0x393   :  { %v3638_v13 = vpop.f32.mrf.mxu1 }
 0x395   :  { %v1820_v14 = vpop.f32.mrf.mxu1 }
 0x397   :  { %v3639_v15 = vpop.f32.mrf.mxu1 }
 0x399   :  { %v1863_v16 = vpop.f32.mrf.mxu1  ;;  %v1998_v17 = vpop.f32.mrf.mxu0 }
 0x39a   :  { %2140 = vperm.xlu0 %3799, %v1863_v16   ;;  %v2156_v50 = vrot.slane %v1998_v17, %v4717_v48 }
 0x39b   :  { %v3644_v18 = vpop.f32.mrf.mxu1  ;;  %v3662_v19 = vpop.f32.mrf.mxu0 }
 0x39d   :  { %v1866_v20 = vpop.f32.mrf.mxu1  ;;  %v2001_v21 = vpop.f32.mrf.mxu0 }
 0x39f   :  { %v3645_v22 = vpop.f32.mrf.mxu1  ;;  %v3663_v23 = vpop.f32.mrf.mxu0 }
 0x3b1   :  { %v1909_v24 = vpop.f32.mrf.mxu1 }
 0x3b2   :  { %2145 = vperm.xlu1 %3800, %v1909_v24  }
 0x3b3   :  { %v3650_v25 = vpop.f32.mrf.mxu1 }
 0x3b5   :  { %v1912_v26 = vpop.f32.mrf.mxu1 }
 0x3b7   :  { %v3651_v27 = vpop.f32.mrf.mxu1 }
 0x3b8   :  { %v2327_v27 = vsel %vm1119_vm0, %v4670_v59, 0 }
 0x3b9   :  { %v1955_v28 = vpop.f32.mrf.mxu1  ;;  %v2084_v29 = vpop.f32.mrf.mxu0 }
 0x3ba   :  { %2150 = vperm.xlu1 %3800, %v1955_v28   ;;  %v2164_v3 = vrot.slane %v2084_v29, %v4717_v48 }
 0x3bb   :  { %v3656_v30 = vpop.f32.mrf.mxu1  ;;  %v3674_v31 = vpop.f32.mrf.mxu0 }
 0x3bc   :  { %v2372_v31 = vsel %vm1119_vm0, %v4684_v5, 0 }
 0x3bd   :  { %v1958_v32 = vpop.f32.mrf.mxu1  ;;  %v2087_v33 = vpop.f32.mrf.mxu0 }
 0x3bf   :  { %v3657_v34 = vpop.f32.mrf.mxu1  ;;  %v3675_v35 = vpop.f32.mrf.mxu0 }
 0x3c1   :  { %v2041_v36 = vpop.f32.mrf.mxu1 }
 0x3c2   :  { %v2160_v57 = vrot.slane %v2041_v36, %v4717_v48 }
 0x3c3   :  { %v3668_v37 = vpop.f32.mrf.mxu1 }
 0x3c5   :  { %v2044_v39 = vpop.f32.mrf.mxu1 }
 0x3c7   :  { %v3669_v40 = vpop.f32.mrf.mxu1 }
 0x3c9   :  { %v2127_v41 = vpop.f32.mrf.mxu1 }
 0x3ca   :  { %v2168_v8 = vrot.slane %v2127_v41, %v4717_v48 }
 0x3cb   :  { %v3680_v42 = vpop.f32.mrf.mxu1 }
 0x3cd   :  { %v2130_v43 = vpop.f32.mrf.mxu1 }
 0x3ce   :  { %v3938_v43 = vld [vmem:[%s4929_s16 + $0x8] sm:$0xff]  }
 0x3cf   :  { %v3681_v44 = vpop.f32.mrf.mxu1 }
 0x3d0   :  { %v3939_v44 = vld [vmem:[%s4929_s16] sm:$0xff]  }
 0x40d   :  { %v2136_v52 = vpop.permute.xlu0 %2135 }
 0x40e   :  { %v2169_v53 = vadd.f32 %v2156_v50, %v2136_v52  ;;  %v3245_v52 = vld [vmem:[%s4930_s15] ss:$0 sm:$0xff] }
 0x410   :  { %v2177_v55 = vmul.f32 0.2, %v2169_v53  ;;  %vm2173_vm9 = vcmp.gt.f32.partialorder %v2169_v53, 0.0 }
 0x412   :  { %v2181_v58 = vsel %vm2173_vm9, %v2169_v53, %v2177_v55 }
 0x413   :  { %v2190_v60 = vsel %vm4721_vm8, %v2181_v58, -1e+30 }
 0x414   :  { %v2194_v61 = vsel %vm1115_vm2, %v2190_v60, -inf }
 0x415   :  { %v2141_v38 = vpop.permute.xlu0 %2140  ;;  %2195 = vmax.xlane.f32.xlu0 %v2194_v61 }
 0x416   :  { %v2170_v62 = vadd.f32 %v2160_v57, %v2141_v38 }
 0x418   :  { %v2178_v63 = vmul.f32 0.2, %v2170_v62  ;;  %vm2174_vm10 = vcmp.gt.f32.partialorder %v2170_v62, 0.0 }
 0x41a   :  { %v2182_v0 = vsel %vm2174_vm10, %v2170_v62, %v2178_v63 }
 0x41b   :  { %v2191_v1 = vsel %vm4721_vm8, %v2182_v0, -1e+30  ;;  %v3246_v0 = vld [vmem:[%s4930_s15 + $0x1] ss:$0 sm:$0xff] }
 0x41c   :  { %v2197_v2 = vsel %vm1115_vm2, %v2191_v1, -inf }
 0x41d   :  { %2198 = vmax.xlane.f32.xlu1 %v2197_v2 }
 0x42d   :  { %v2146_v4 = vpop.permute.xlu1 %2145 }
 0x42e   :  { %v2171_v6 = vadd.f32 %v2164_v3, %v2146_v4 }
 0x430   :  { %v2179_v7 = vmul.f32 0.2, %v2171_v6  ;;  %vm2175_vm11 = vcmp.gt.f32.partialorder %v2171_v6, 0.0 }
 0x432   :  { %v2183_v9 = vsel %vm2175_vm11, %v2171_v6, %v2179_v7  ;;  %v3944_v7 = vld [vmem:[%s4929_s16 + $0x38] sm:$0xff]  }
 0x433   :  { %v2192_v10 = vsel %vm4721_vm8, %v2183_v9, -1e+30 }
 0x434   :  { %v2200_v11 = vsel %vm1115_vm2, %v2192_v10, -inf }
 0x435   :  { %v2151_v12 = vpop.permute.xlu1 %2150  ;;  %2201 = vmax.xlane.f32.xlu0 %v2200_v11  ;;  %v3945_v11 = vld [vmem:[%s4929_s16 + $0x30] sm:$0xff]  }
 0x436   :  { %v2172_v13 = vadd.f32 %v2168_v8, %v2151_v12 }
 0x438   :  { %v2180_v14 = vmul.f32 0.2, %v2172_v13  ;;  %vm2176_vm12 = vcmp.gt.f32.partialorder %v2172_v13, 0.0 }
 0x43a   :  { %v2184_v15 = vsel %vm2176_vm12, %v2172_v13, %v2180_v14 }
 0x43b   :  { %v2193_v16 = vsel %vm4721_vm8, %v2184_v15, -1e+30  ;;  %v3247_v15 = vld [vmem:[%s4930_s15 + $0x2] ss:$0 sm:$0xff] }
 0x43c   :  { %v2203_v17 = vsel %vm1115_vm2, %v2193_v16, -inf }
 0x43d   :  { %2204 = vmax.xlane.f32.xlu0 %v2203_v17 }
 0x49e   :  { %v2196_v18 = vpop.xlane.xlu0 %2195 }
 0x49f   :  { %v2206_v19 = vsub.f32 %v2190_v60, %v2196_v18  ;;  %v3942_v60 = vld [vmem:[%s4929_s16 + $0x28] sm:$0xff]  }
 0x4a1   :  { %v2210_v20 = vmul.f32 1.442695, %v2206_v19 }
 0x4a3   :  { %3962 = vpow2.f32 %v2210_v20 }
 0x4a6   :  { %v2199_v21 = vpop.xlane.xlu1 %2198 }
 0x4a7   :  { %v2207_v22 = vsub.f32 %v2191_v1, %v2199_v21  ;;  %v3943_v1 = vld [vmem:[%s4929_s16 + $0x20] sm:$0xff]  }
 0x4a9   :  { %v2212_v23 = vmul.f32 1.442695, %v2207_v22 }
 0x4ab   :  { %3964 = vpow2.f32 %v2212_v23 }
 0x4b0   :  { %v3963_v24 = vpop.eup %3962 }
 0x4b1   :  { %v2218_v25 = vsel %vm1115_vm2, %v3963_v24, 0.0  ;;  %v2230_v26 = vpack.c.bf16 %v3963_v24, %v3963_v24  ;;  %v3248_v24 = vld [vmem:[%s4930_s15 + $0x3] ss:$0 sm:$0xff] }
 0x4b2   :  { %2219 = vadd.xlane.f32.xlu1 %v2218_v25 }
 0x4b3   :  { %3685 = vmatmul.mubr.msk.bf16.vlgmr.msra.gmra.mxu0 %vm1115_vm2, %v2230_v26 }
 0x4b4   :  { %3695 = vmatpush3.bf16.msra.mxu0 %v2327_v27  ;;  %3696 = vmatprep.mubr.msk.bf16.mxu0 %vm3983_vm1, %v3982_v56 }
 0x4b5   :  { %3706 = vmatprep.subr.bf16.mxu0 %v3982_v56 }
 0x4b8   :  { %v3965_v28 = vpop.eup %3964 }
 0x4b9   :  { %v2221_v29 = vsel %vm1115_vm2, %v3965_v28, 0.0  ;;  %v2231_v30 = vpack.c.bf16 %v3965_v28, %v3965_v28 }
 0x4ba   :  { %2222 = vadd.xlane.f32.xlu0 %v2221_v29 }
 0x4bb   :  { %3691 = vmatmul.mubr.msk.bf16.vlgmr.msra.gmra.mxu1 %vm1115_vm2, %v2231_v30 }
 0x4bc   :  { %3701 = vmatpush3.bf16.msra.mxu1 %v2372_v31  ;;  %3702 = vmatprep.mubr.msk.bf16.mxu1 %vm3983_vm1, %v3982_v56  ;;  %v2699_v31 = vld [vmem:[%s4931_s18] sm:$0x1] }
 0x4bd   :  { %3714 = vmatprep.subr.bf16.mxu1 %v3982_v56 }
 0x4be   :  { %v2202_v59 = vpop.xlane.xlu0 %2201 }
 0x4bf   :  { %v2208_v32 = vsub.f32 %v2192_v10, %v2202_v59 }
 0x4c1   :  { %v2214_v33 = vmul.f32 1.442695, %v2208_v32 }
 0x4c3   :  { %3966 = vpow2.f32 %v2214_v33 }
 0x4c6   :  { %v2205_v34 = vpop.xlane.xlu0 %2204 }
 0x4c7   :  { %v2209_v35 = vsub.f32 %v2193_v16, %v2205_v34 }
 0x4c9   :  { %v2216_v36 = vmul.f32 1.442695, %v2209_v35 }
 0x4cb   :  { %3968 = vpow2.f32 %v2216_v36 }
 0x4d0   :  { %v3967_v37 = vpop.eup %3966 }
 0x4d1   :  { %v2224_v39 = vsel %vm1115_vm2, %v3967_v37, 0.0  ;;  %v2232_v40 = vpack.c.bf16 %v3967_v37, %v3967_v37 }
 0x4d2   :  { %2225 = vadd.xlane.f32.xlu1 %v2224_v39 }
 0x4d3   :  { %3697 = vmatmul.mubr.msk.bf16.vlgmr.msra.gmra.mxu0 %vm1115_vm2, %v2232_v40 }
 0x4d4   :  { %3710 = vmatprep.mubr.msk.bf16.mxu0 %vm3983_vm1, %v3982_v56  ;;  %3707 = vmatpush3.bf16.msra.mxu0 %v3938_v43 }
 0x4d5   :  { %3708 = vmatprep.subr.bf16.mxu0 %v3982_v56 }
 0x4d8   :  { %v3969_v5 = vpop.eup %3968  ;;  %3709 = vmatpush3.bf16.msra.mxu0 %v3939_v44 }
 0x4d9   :  { %v2227_v41 = vsel %vm1115_vm2, %v3969_v5, 0.0  ;;  %v2233_v42 = vpack.c.bf16 %v3969_v5, %v3969_v5  ;;  %3722 = vmatprep.subr.bf16.mxu0 %v3982_v56 }
 0x4da   :  { %2228 = vadd.xlane.f32.xlu0 %v2227_v41 }
 0x4db   :  { %3703 = vmatmul.mubr.msk.bf16.vlgmr.msra.gmra.mxu1 %vm1115_vm2, %v2233_v42 }
 0x4dc   :  { %3718 = vmatprep.mubr.msk.bf16.mxu1 %vm3983_vm1, %v3982_v56  ;;  %3715 = vmatpush3.bf16.msra.mxu1 %v3940_v45 }
 0x4dd   :  { %3716 = vmatprep.subr.bf16.mxu1 %v3982_v56 }
 0x4e0   :  { %3717 = vmatpush3.bf16.msra.mxu1 %v3941_v46 }
 0x4e1   :  { %3730 = vmatprep.subr.bf16.mxu1 %v3982_v56 }
 0x53b   :  { %v2220_v47 = vpop.xlane.xlu1 %2219 }
 0x53c   :  { %3970 = vrcp.f32 %v2220_v47 }
 0x543   :  { %v2223_v49 = vpop.xlane.xlu0 %2222 }
 0x544   :  { %3972 = vrcp.f32 %v2223_v49 }
 0x549   :  { %v3971_v50 = vpop.eup %3970 }
 0x551   :  { %v3973_v62 = vpop.eup %3972 }
 0x55b   :  { %v2226_v10 = vpop.xlane.xlu1 %2225 }
 0x55c   :  { %3974 = vrcp.f32 %v2226_v10 }
 0x563   :  { %v2229_v12 = vpop.xlane.xlu0 %2228 }
 0x564   :  { %3976 = vrcp.f32 %v2229_v12 }
 0x569   :  { %v3975_v13 = vpop.eup %3974 }
 0x571   :  { %v3977_v22 = vpop.eup %3976 }
 0x573   :  { %v2273_v51 = vpop.f32.mrf.mxu0 }
 0x574   :  { %v2418_v53 = vmul.f32 %v3971_v50, %v2273_v51 }
 0x575   :  { %v3686_v55 = vpop.f32.mrf.mxu0 }
 0x576   :  { %v2450_v57 = vadd.f32 %v3245_v52, %v2418_v53  ;;  %v2698_v53 = vld [vmem:[%s4932_s17] sm:$0x1] }
 0x577   :  { %v2276_v58 = vpop.f32.mrf.mxu0 }
 0x578   :  { %v2454_v61 = vpack.c.bf16 %v2450_v57, %v2450_v57 }
 0x579   :  { %v3687_v38 = vpop.f32.mrf.mxu0 }
 0x57a   :  { %3711 = vmatmul.mubr.msk.bf16.vlgmr.msra.gmra.mxu0 %vm1776_vm6, %v2454_v61 }
 0x57b   :  { %v2318_v63 = vpop.f32.mrf.mxu1  ;;  %3723 = vmatpush3.bf16.msra.mxu0 %v3942_v60  ;;  %3726 = vmatprep.mubr.msk.bf16.mxu0 %vm3983_vm1, %v3982_v56 }
 0x57c   :  { %v2419_v2 = vmul.f32 %v3973_v62, %v2318_v63  ;;  %3724 = vmatprep.subr.bf16.mxu0 %v3982_v56 }
 0x57d   :  { %v3692_v3 = vpop.f32.mrf.mxu1 }
 0x57e   :  { %v2451_v4 = vadd.f32 %v3246_v0, %v2419_v2 }
 0x57f   :  { %v2321_v6 = vpop.f32.mrf.mxu1  ;;  %3725 = vmatpush3.bf16.msra.mxu0 %v3943_v1 }
 0x580   :  { %v2455_v8 = vpack.c.bf16 %v2451_v4, %v2451_v4  ;;  %3738 = vmatprep.subr.bf16.mxu0 %v3982_v56 }
 0x581   :  { %v3693_v9 = vpop.f32.mrf.mxu1 }
 0x582   :  { %3719 = vmatmul.mubr.msk.bf16.vlgmr.msra.gmra.mxu1 %vm1776_vm6, %v2455_v8 }
 0x583   :  { %3731 = vmatpush3.bf16.msra.mxu1 %v3944_v7  ;;  %3734 = vmatprep.mubr.msk.bf16.mxu1 %vm3983_vm1, %v3982_v56 }
 0x584   :  { %3732 = vmatprep.subr.bf16.mxu1 %v3982_v56 }
 0x587   :  { %3733 = vmatpush3.bf16.msra.mxu1 %v3945_v11 }
 0x588   :  { %3744 = vmatprep.subr.bf16.mxu1 %v3982_v56 }
 0x593   :  { %v2363_v14 = vpop.f32.mrf.mxu0 }
 0x594   :  { %v2420_v16 = vmul.f32 %v3975_v13, %v2363_v14  ;;  %v3948_v14 = vld [vmem:[%s4933_s20 + $0x28] sm:$0xff]  }
 0x595   :  { %v3698_v17 = vpop.f32.mrf.mxu0 }
 0x596   :  { %v2452_v18 = vadd.f32 %v3247_v15, %v2420_v16  ;;  %v3949_v15 = vld [vmem:[%s4933_s20 + $0x20] sm:$0xff]   ;;  %v3950_v16 = vld [vmem:[%s4933_s20 + $0x18] sm:$0xff]   ;;  %v3951_v17 = vld [vmem:[%s4933_s20 + $0x10] sm:$0xff]  }
 0x597   :  { %v2366_v19 = vpop.f32.mrf.mxu0 }
 0x598   :  { %v2456_v20 = vpack.c.bf16 %v2452_v18, %v2452_v18  ;;  %v3952_v18 = vld [vmem:[%s4933_s20 + $0x8] sm:$0xff]   ;;  %v3953_v19 = vld [vmem:[%s4933_s20] sm:$0xff]  }
 0x599   :  { %v3699_v21 = vpop.f32.mrf.mxu0 }
 0x59a   :  { %3727 = vmatmul.mubr.msk.bf16.vlgmr.msra.gmra.mxu0 %vm1776_vm6, %v2456_v20  ;;  %v3954_v20 = vld [vmem:[%s4934_s22 + $0x38] sm:$0xff]   ;;  %v3955_v21 = vld [vmem:[%s4934_s22 + $0x30] sm:$0xff]  }
 0x59b   :  { %v2408_v23 = vpop.f32.mrf.mxu1  ;;  %3740 = vmatprep.mubr.msk.bf16.mxu0 %vm3983_vm1, %v3982_v56  ;;  %3739 = vmatpush3.bf16.xpose.msra.mxu0 %v2699_v31 }
 0x59c   :  { %v2421_v25 = vmul.f32 %v3977_v22, %v2408_v23  ;;  %3750 = vmatprep.subr.bf16.mxu0 %v3982_v56  ;;  %v3956_v22 = vld [vmem:[%s4934_s22 + $0x28] sm:$0xff]   ;;  %v3957_v23 = vld [vmem:[%s4934_s22 + $0x20] sm:$0xff]  }
 0x59d   :  { %v3704_v26 = vpop.f32.mrf.mxu1 }
 0x59e   :  { %v2453_v27 = vadd.f32 %v3248_v24, %v2421_v25  ;;  %v3958_v24 = vld [vmem:[%s4934_s22 + $0x18] sm:$0xff]   ;;  %v3959_v25 = vld [vmem:[%s4934_s22 + $0x10] sm:$0xff]  }
 0x59f   :  { %v2411_v28 = vpop.f32.mrf.mxu1 }
 0x5a0   :  { %v2457_v29 = vpack.c.bf16 %v2453_v27, %v2453_v27 }
 0x5a1   :  { %v3705_v30 = vpop.f32.mrf.mxu1 }
 0x5a2   :  { %3735 = vmatmul.mubr.msk.bf16.vlgmr.msra.gmra.mxu1 %vm1776_vm6, %v2457_v29  ;;  %v3262_v29 = vld [vmem:[%s4935_s19] ss:$0 sm:$0xff] }
 0x5a3   :  { %3746 = vmatprep.mubr.msk.bf16.mxu1 %vm3983_vm1, %v3982_v56 }
 0x63a   :  { %v2523_v59 = vpop.f32.mrf.mxu0 }
 0x63c   :  { %v3712_v32 = vpop.f32.mrf.mxu0 }
 0x63e   :  { %v2526_v33 = vpop.f32.mrf.mxu0 }
 0x640   :  { %v3713_v34 = vpop.f32.mrf.mxu0 }
 0x642   :  { %v2578_v35 = vpop.f32.mrf.mxu1 }
 0x643   :  { %v2694_v42 = vadd.f32 %v2578_v35, %v2523_v59  ;;  %v3960_v35 = vld [vmem:[%s4934_s22 + $0x8] sm:$0xff]  }
 0x644   :  { %v3720_v36 = vpop.f32.mrf.mxu1 }
 0x645   :  { %v3961_v36 = vld [vmem:[%s4934_s22] sm:$0xff]  }
 0x646   :  { %v2581_v37 = vpop.f32.mrf.mxu1 }
 0x647   :  { %v3263_v37 = vld [vmem:[%s4936_s21] ss:$0 sm:$0xff] }
 0x648   :  { %v3721_v39 = vpop.f32.mrf.mxu1 }
 0x65a   :  { %v2633_v40 = vpop.f32.mrf.mxu0 }
 0x65b   :  { %v2695_v44 = vadd.f32 %v2694_v42, %v2633_v40 }
 0x65c   :  { %v3728_v5 = vpop.f32.mrf.mxu0 }
 0x65e   :  { %v2636_v41 = vpop.f32.mrf.mxu0 }
 0x660   :  { %v3729_v43 = vpop.f32.mrf.mxu0 }
 0x662   :  { %v2688_v45 = vpop.f32.mrf.mxu1 }
 0x663   :  { %v2696_v46 = vadd.f32 %v2695_v44, %v2688_v45 }
 0x664   :  { %v3736_v47 = vpop.f32.mrf.mxu1 }
 0x665   :  { %v2697_v49 = vpack.c.bf16 %v2696_v46, %v2696_v46 }
 0x666   :  { %v2691_v50 = vpop.f32.mrf.mxu1 }
 0x667   :  { %3741 = vmatmul.mubr.bf16.vlgmr.msra.gmra.mxu0 %v2697_v49  ;;  %3745 = vmatpush3.bf16.xpose.msra.mxu1 %v2697_v49  ;;  %v2808_v51 = vsel %vm1119_vm0, %v2697_v49, 0 }
 0x668   :  { %v3737_v52 = vpop.f32.mrf.mxu1  ;;  %3751 = vmatpush3.bf16.msra.mxu0 %v2808_v51  ;;  %3752 = vmatprep.mubr.msk.bf16.mxu0 %vm3983_vm1, %v3982_v56 }
 0x669   :  { %3756 = vmatprep.subr.bf16.mxu1 %v3982_v56  ;;  %3776 = vmatprep.subr.bf16.mxu0 %v3982_v56 }
 0x66e   :  { %3747 = vmatmul.mubr.bf16.vlgmr.msra.gmra.mxu1 %v2698_v53 }
 0x66f   :  { %3772 = vmatprep.mubr.msk.bf16.mxu1 %vm3983_vm1, %v3982_v56 }
 0x727   :  { %v2734_v55 = vpop.f32.mrf.mxu0 }
 0x728   :  { %2782 = vperm.xlu1 %3800, %v2734_v55  }
 0x729   :  { %v3742_v57 = vpop.f32.mrf.mxu0 }
 0x72b   :  { %v2737_v58 = vpop.f32.mrf.mxu0 }
 0x72d   :  { %v3743_v60 = vpop.f32.mrf.mxu0 }
 0x72e   :  { %v2774_v61 = vpop.f32.mrf.mxu1 }
 0x72f   :  { %v2788_v0 = vrot.slane %v2774_v61, %v4717_v48  ;;  %v3946_v48 = vld [vmem:[%s4933_s20 + $0x38] sm:$0xff]  }
 0x730   :  { %v3748_v38 = vpop.f32.mrf.mxu1  ;;  %3757 = vmatpush3.bf16.msra.mxu1 %v3946_v48 }
 0x731   :  { %3758 = vmatprep.subr.bf16.mxu1 %v3982_v56 }
 0x732   :  { %v2777_v62 = vpop.f32.mrf.mxu1 }
 0x734   :  { %v3749_v63 = vpop.f32.mrf.mxu1  ;;  %3759 = vmatpush3.bf16.msra.mxu1 %v3947_v54 }
 0x735   :  { %3760 = vmatprep.subr.bf16.mxu1 %v3982_v56 }
 0x738   :  { %3761 = vmatpush3.bf16.msra.mxu1 %v3948_v14 }
 0x739   :  { %3762 = vmatprep.subr.bf16.mxu1 %v3982_v56 }
 0x73c   :  { %3763 = vmatpush3.bf16.msra.mxu1 %v3949_v15 }
 0x73d   :  { %3764 = vmatprep.subr.bf16.mxu1 %v3982_v56 }
 0x740   :  { %3765 = vmatpush3.bf16.msra.mxu1 %v3950_v16 }
 0x741   :  { %3766 = vmatprep.subr.bf16.mxu1 %v3982_v56 }
 0x744   :  { %3767 = vmatpush3.bf16.msra.mxu1 %v3951_v17 }
 0x745   :  { %3768 = vmatprep.subr.bf16.mxu1 %v3982_v56 }
 0x748   :  { %3769 = vmatpush3.bf16.msra.mxu1 %v3952_v18 }
 0x749   :  { %3770 = vmatprep.subr.bf16.mxu1 %v3982_v56 }
 0x74c   :  { %3771 = vmatpush3.bf16.msra.mxu1 %v3953_v19 }
 0x7a3   :  { %v2783_v1 = vpop.permute.xlu1 %2782 }
 0x7a4   :  { %v2789_v2 = vadd.f32 %v2788_v0, %v2783_v1 }
 0x7a6   :  { %v2791_v3 = vmul.f32 0.2, %v2789_v2  ;;  %vm2790_vm13 = vcmp.gt.f32.partialorder %v2789_v2, 0.0 }
 0x7a8   :  { %v2792_v4 = vsel %vm2790_vm13, %v2789_v2, %v2791_v3 }
 0x7a9   :  { %v2793_v6 = vsel %vm4721_vm8, %v2792_v4, -1e+30 }
 0x7aa   :  { %v2794_v7 = vsel %vm1115_vm2, %v2793_v6, -inf }
 0x7ab   :  { %2795 = vmax.xlane.f32.xlu0 %v2794_v7 }
 0x834   :  { %v2796_v8 = vpop.xlane.xlu0 %2795 }
 0x835   :  { %v2797_v9 = vsub.f32 %v2793_v6, %v2796_v8 }
 0x837   :  { %v2798_v10 = vmul.f32 1.442695, %v2797_v9 }
 0x839   :  { %3978 = vpow2.f32 %v2798_v10 }
 0x846   :  { %v3979_v11 = vpop.eup %3978 }
 0x847   :  { %v2800_v12 = vsel %vm1115_vm2, %v3979_v11, 0.0  ;;  %v2803_v13 = vpack.c.bf16 %v3979_v11, %v3979_v11 }
 0x848   :  { %2801 = vadd.xlane.f32.xlu0 %v2800_v12 }
 0x849   :  { %3753 = vmatmul.mubr.msk.bf16.vlgmr.msra.gmra.mxu0 %vm1115_vm2, %v2803_v13 }
 0x84a   :  { %3792 = vmatprep.mubr.msk.bf16.mxu0 %vm3983_vm1, %v3982_v56  ;;  %3777 = vmatpush3.bf16.msra.mxu0 %v3954_v20 }
 0x84b   :  { %3778 = vmatprep.subr.bf16.mxu0 %v3982_v56 }
 0x84e   :  { %3779 = vmatpush3.bf16.msra.mxu0 %v3955_v21 }
 0x84f   :  { %3780 = vmatprep.subr.bf16.mxu0 %v3982_v56 }
 0x852   :  { %3781 = vmatpush3.bf16.msra.mxu0 %v3956_v22 }
 0x853   :  { %3782 = vmatprep.subr.bf16.mxu0 %v3982_v56 }
 0x856   :  { %3783 = vmatpush3.bf16.msra.mxu0 %v3957_v23 }
 0x857   :  { %3784 = vmatprep.subr.bf16.mxu0 %v3982_v56 }
 0x85a   :  { %3785 = vmatpush3.bf16.msra.mxu0 %v3958_v24 }
 0x85b   :  { %3786 = vmatprep.subr.bf16.mxu0 %v3982_v56 }
 0x85e   :  { %3787 = vmatpush3.bf16.msra.mxu0 %v3959_v25 }
 0x85f   :  { %3788 = vmatprep.subr.bf16.mxu0 %v3982_v56 }
 0x862   :  { %3789 = vmatpush3.bf16.msra.mxu0 %v3960_v35 }
 0x863   :  { %3790 = vmatprep.subr.bf16.mxu0 %v3982_v56  ;;  %v3272_v56 = vld [vmem:[%s4937_s23] ss:$0 sm:$0xff] }
 0x866   :  { %3791 = vmatpush3.bf16.msra.mxu0 %v3961_v36 }
 0x8d1   :  { %v2802_v26 = vpop.xlane.xlu0 %2801 }
 0x8d2   :  { %3980 = vrcp.f32 %v2802_v26 }
 0x8df   :  { %v3981_v27 = vpop.eup %3980 }
 0x909   :  { %v2844_v28 = vpop.f32.mrf.mxu0 }
 0x90a   :  { %v2851_v30 = vmul.f32 %v3981_v27, %v2844_v28 }
 0x90b   :  { %v3754_v31 = vpop.f32.mrf.mxu0 }
 0x90c   :  { %v2859_v59 = vadd.f32 %v3262_v29, %v2851_v30 }
 0x90d   :  { %v2847_v32 = vpop.f32.mrf.mxu0 }
 0x90e   :  { %v2876_v33 = vpack.c.bf16 %v2859_v59, %v2859_v59 }
 0x90f   :  { %v3755_v34 = vpop.f32.mrf.mxu0 }
 0x910   :  { %3773 = vmatmul.mubr.bf16.vlgmr.msra.gmra.mxu1 %v2876_v33 }
 0x9d0   :  { %v2966_v39 = vpop.f32.mrf.mxu1 }
 0x9d1   :  { %v2967_v40 = vadd.f32 %v3263_v37, %v2966_v39 }
 0x9d2   :  { %v3774_v5 = vpop.f32.mrf.mxu1 }
 0x9d3   :  { %vm2972_vm14 = vcmp.gt.f32.partialorder %v2967_v40, 0.0  ;;  %v2973_v41 = vmul.f32 0.01, %v2967_v40 }
 0x9d4   :  { %v2969_v42 = vpop.f32.mrf.mxu1 }
 0x9d5   :  { %v2974_v43 = vsel %vm2972_vm14, %v2967_v40, %v2973_v41 }
 0x9d6   :  { %v2991_v44 = vpack.c.bf16 %v2974_v43, %v2974_v43  ;;  %v3775_v45 = vpop.f32.mrf.mxu1 }
 0x9d8   :  { %3793 = vmatmul.mubr.bf16.vlgmr.msra.gmra.mxu0 %v2991_v44 }
 0xa98   :  { %v3081_v46 = vpop.f32.mrf.mxu0 }
 0xa99   :  { %v3082_v47 = vadd.f32 %v3272_v56, %v3081_v46 }
 0xa9a   :  { %v3794_v49 = vpop.f32.mrf.mxu0 }
 0xa9b   :  { %3087 = vst [vmem:[%s4938_s24] sm:$0xff] %v3082_v47 }
 0xa9c   :  { %v3084_v50 = vpop.f32.mrf.mxu0 }
 0xa9e   :  { %v3795_v51 = vpop.f32.mrf.mxu0 }

</bundles_post_ra>
